<compile_context>
chip_gen: v5e
topology: v5e:2x2
jax: 0.10.0
libtpu: 0.0.40
codegen_flags: <defaults>
</compile_context>

<pallas_src>
import functools
import numpy as np
import jax
import jax.numpy as jnp
from jax.experimental import pallas as pl
from jax.experimental.pallas import tpu as pltpu


def _round_up(x, m):
    return ((x + m - 1) // m) * m


def _conv_dims(hin, win):
    """Output (ho, wo) and padded-input (hp, wp) dims for a 3x3/stride-2/pad-1 conv."""
    ho = (hin - 1) // 2 + 1
    wo = (win - 1) // 2 + 1
    # hp even (needed for the in-kernel row-pair reshape) and >= hin + 2.
    return ho, wo, 2 * ho + 2, 2 * wo + 2


def _hconv_matrix(w3x3, wp, wo):
    """A[2*oj + dj, di*wo + oj] = w[di, dj].

    Applies the three 3-tap weight ROWS horizontally (including the stride-2 column
    subsample) to every padded image row in a single small matmul.  The vertical
    stride-2 selection + sum over di is done with shifted adds on the VPU.
    """
    a = np.zeros((wp, 3 * wo), dtype=np.float32)
    for di in range(3):
        for dj in range(3):
            for oj in range(wo):
                a[2 * oj + dj, di * wo + oj] = float(w3x3[di, dj])
    return a


def _actor_kernel(num_sheet, batch, layer_dims, conv_bias, cnn_dim, prod_dim,
                  stocks_ref, prod_ref, mask_ref, a1_ref, a2_ref, a3_ref,
                  w1_ref, b1_ref, w2_ref, b2_ref, out_ref,
                  xp1, xp2, xp3, feat):
    f32, bf16 = jnp.float32, jnp.bfloat16
    S, B = num_sheet, batch
    a_refs = (a1_ref, a2_ref, a3_ref)
    xps = (xp1, xp2, xp3)

    # Zero the padded scratches: gives the convs their zero padding and keeps unused
    # feature lanes at exactly 0 (they only ever hit zero rows of w1).
    xp1[...] = jnp.zeros_like(xp1)
    xp2[...] = jnp.zeros_like(xp2)
    xp3[...] = jnp.zeros_like(xp3)
    feat[...] = jnp.zeros_like(feat)

    # Binarized int8 stocks -> interior of the zero-padded conv-1 input.
    h0, w0 = layer_dims[0][0], layer_dims[0][1]
    xp1[:, 1:h0 + 1, :, 1:w0 + 1] = stocks_ref[...].astype(f32)

    # Three stride-2 3x3 "sliced-stride" conv layers.  Layout is (S, Hp, B, Wp):
    # B (a multiple of 8) sits on the sublane dim and Wp on the lane dim, so the
    # reshapes below never relayout the minor tile.
    y = None
    for l in range(3):
        _, _, hp, wp, ho, wo = layer_dims[l]
        x_l = xps[l][...]                                              # (S, Hp, B, Wp)
        z = jnp.dot(x_l.reshape(S * hp * B, wp), a_refs[l][...],
                    preferred_element_type=f32)                        # (S*Hp*B, 3*Wo)
        z = z.reshape(S, hp // 2, 2, B, 3 * wo)
        t0 = z[:, 0:ho, 0, :, 0:wo]                                    # rows 2*oi    , w row 0
        t1 = z[:, 0:ho, 1, :, wo:2 * wo]                               # rows 2*oi + 1, w row 1
        t2 = z[:, 1:ho + 1, 0, :, 2 * wo:3 * wo]                       # rows 2*oi + 2, w row 2
        y = jnp.maximum(t0 + t1 + t2 + conv_bias[l], 0.0)              # (S, Ho, B, Wo)
        if l < 2:
            # Round to bf16 between layers (mirrored in the reference) and write the
            # interior of the next layer's zero-padded input.
            xps[l + 1][:, 1:ho + 1, :, 1:wo + 1] = y.astype(bf16).astype(f32)

    # Flatten conv features into the lane-padded feature slab in PyTorch's
    # (sheet, row, col) order, followed by the product features -> fc1 is ONE GEMM.
    h3, w3 = layer_dims[2][4], layer_dims[2][5]
    for s in range(S):
        for oi in range(h3):
            off = (s * h3 + oi) * w3
            feat[:, off:off + w3] = y[s, oi]                           # (B, W3)
    feat[:, cnn_dim:cnn_dim + prod_dim] = prod_ref[...]

    # fc1 + fc2 (bf16 operands, f32 accumulation) + invalid-action mask + softmax.
    x = feat[...].astype(bf16)                                         # (B, k_pad)
    h = jnp.maximum(jnp.dot(x, w1_ref[...], preferred_element_type=f32) + b1_ref[...], 0.0)
    logits = jnp.dot(h.astype(bf16), w2_ref[...], preferred_element_type=f32) + b2_ref[...]
    logits = jnp.where(mask_ref[...] != 0, logits, jnp.float32(-1e9))
    m = jnp.max(logits, axis=-1, keepdims=True)
    e = jnp.exp(logits - m)
    denom = jnp.sum(e, axis=-1, keepdims=True)
    # approx=False keeps probabilities summing to 1 within f32; set approx=True when
    # strict prob sums are not required (moves the divide fully to the EUP approx).
    out_ref[...] = e * pl.reciprocal(denom, approx=False)


class ActorNetworkPallas:
    def __init__(self, num_sheet, max_w, max_h, max_product_type,
                 max_product_per_type, hidden_dim, key):
        self.num_sheet = num_sheet
        self.max_w = max_w
        self.max_h = max_h
        self.max_product_type = max_product_type
        self.max_product_per_type = max_product_per_type
        self.hidden_dim = hidden_dim

        ks = jax.random.split(key, 8)
        bf16 = jnp.bfloat16
        # Conv2d(1,1,3,stride=2,pad=1) x3, weights rounded to bf16-representable f32
        # so the kernel and the reference agree regardless of the MXU f32 pass count.
        self.conv_w = [np.asarray(jax.random.uniform(ks[i], (3, 3), jnp.float32,
                                                     -1.0 / 3, 1.0 / 3)
                                  .astype(bf16).astype(jnp.float32)) for i in range(3)]
        self.conv_b = np.asarray(jax.random.uniform(ks[3], (3,), jnp.float32,
                                                    -1.0 / 3, 1.0 / 3))

        # Per-layer conv geometry: (Hin, Win, Hp, Wp, Ho, Wo).
        dims = []
        hin, win = max_w, max_h
        for _ in range(3):
            ho, wo, hp, wp = _conv_dims(hin, win)
            dims.append((hin, win, hp, wp, ho, wo))
            hin, win = ho, wo
        self.layer_dims = tuple(dims)
        self.h3, self.w3 = dims[2][4], dims[2][5]

        # Tiny per-layer horizontal "sliced-stride" conv matrices (f32, bf16-exact).
        self.a_mats = tuple(jnp.asarray(_hconv_matrix(self.conv_w[l],
                                                      dims[l][3], dims[l][5]))
                            for l in range(3))

        cnn_output_dim = num_sheet * (max_w // 8 + 1) * (max_h // 8 + 1)
        assert cnn_output_dim == num_sheet * self.h3 * self.w3, \
            "pick max_w/max_h so the PyTorch fc1 sizing formula matches the conv output"
        self.cnn_dim = cnn_output_dim
        self.prod_dim = 6 * max_product_type
        self.input_dim = self.cnn_dim + self.prod_dim
        self.num_actions = num_sheet * max_product_type

        # fc params (bf16-representable f32 weights; f32 biases).
        b1 = 1.0 / np.sqrt(self.input_dim)
        self.fc1_w = np.asarray(jax.random.uniform(ks[4], (self.input_dim, hidden_dim),
                                                   jnp.float32, -b1, b1)
                                .astype(bf16).astype(jnp.float32))
        self.fc1_b = np.asarray(jax.random.uniform(ks[5], (1, hidden_dim),
                                                   jnp.float32, -b1, b1))
        b2 = 1.0 / np.sqrt(hidden_dim)
        self.fc2_w = np.asarray(jax.random.uniform(ks[6], (hidden_dim, self.num_actions),
                                                   jnp.float32, -b2, b2)
                                .astype(bf16).astype(jnp.float32))
        self.fc2_b = np.asarray(jax.random.uniform(ks[7], (1, self.num_actions),
                                                   jnp.float32, -b2, b2))

        # Lane-padded (128) kernel weights: bf16 operands, zero padding beyond the
        # real rows/cols, real columns sliced off in the wrapper.
        self.hidden_pad = _round_up(hidden_dim, 128)
        self.a_pad = _round_up(self.num_actions, 128)
        self.k_pad = _round_up(self.input_dim, 128)
        w1p = np.zeros((self.k_pad, self.hidden_pad), np.float32)
        w1p[:self.input_dim, :hidden_dim] = self.fc1_w
        b1p = np.zeros((1, self.hidden_pad), np.float32)
        b1p[:, :hidden_dim] = self.fc1_b
        w2p = np.zeros((self.hidden_pad, self.a_pad), np.float32)
        w2p[:hidden_dim, :self.num_actions] = self.fc2_w
        b2p = np.zeros((1, self.a_pad), np.float32)
        b2p[:, :self.num_actions] = self.fc2_b
        self.w1p = jnp.asarray(w1p, jnp.bfloat16)
        self.b1p = jnp.asarray(b1p)
        self.w2p = jnp.asarray(w2p, jnp.bfloat16)
        self.b2p = jnp.asarray(b2p)

        self._jitted = {}   # padded batch size -> cached jitted pallas forward

    # ---- cached pallas_call + jit, built once per PADDED batch size ----
    def _build_forward(self, b_pad):
        S = self.num_sheet
        dims = self.layer_dims
        kernel = functools.partial(
            _actor_kernel, S, b_pad, dims,
            tuple(float(v) for v in self.conv_b),
            self.cnn_dim, self.prod_dim)
        vspec = pl.BlockSpec(memory_space=pltpu.MemorySpace.VMEM)
        call = pl.pallas_call(
            kernel,
            out_shape=jax.ShapeDtypeStruct((b_pad, self.a_pad), jnp.float32),
            in_specs=[vspec] * 10,
            out_specs=vspec,
            scratch_shapes=[
                pltpu.VMEM((S, dims[0][2], b_pad, dims[0][3]), jnp.float32),
                pltpu.VMEM((S, dims[1][2], b_pad, dims[1][3]), jnp.float32),
                pltpu.VMEM((S, dims[2][2], b_pad, dims[2][3]), jnp.float32),
                pltpu.VMEM((b_pad, self.k_pad), jnp.float32),
            ],
        )
        a1, a2, a3 = self.a_mats
        w1p, b1p, w2p, b2p = self.w1p, self.b1p, self.w2p, self.b2p

        def fwd(stocks_i8, prod_f32, mask_i8):
            # (B_pad, S, H, W) int8 -> kernel layout (S, H, B_pad, W); layout plumbing
            # only, stays outside the kernel.
            x = jnp.transpose(stocks_i8, (1, 2, 0, 3))
            return call(x, prod_f32, mask_i8, a1, a2, a3, w1p, b1p, w2p, b2p)

        return jax.jit(fwd)

    def _get_forward(self, b_pad):
        fn = self._jitted.get(b_pad)
        if fn is None:
            fn = self._build_forward(b_pad)
            self._jitted[b_pad] = fn
        return fn

    # ---- host-side glue (observation dict parsing; tiny arrays, as in PyTorch) ----
    def _product_features(self, observation_products):
        feats = []
        for product in observation_products:
            length, width = product['size']
            quantity = product['quantity']
            feats.append([length, width, quantity])
            feats.append([width, length, quantity])
        while len(feats) < 2 * self.max_product_type:
            feats.append([0.0, 0.0, 0.0])
        feats = np.array(feats[:2 * self.max_product_type], dtype=np.float32)
        return feats.reshape(-1)

    def _valid_mask(self, observation_products):
        valid = np.zeros(self.num_actions, dtype=np.float32)
        for sheet in range(self.num_sheet):
            for product in range(min(len(observation_products), self.max_product_type)):
                idx = sheet * self.max_product_type + product
                valid[idx] = 1.0 if observation_products[product]['quantity'] > 0 else 0.0
        if not valid.any():
            valid[:] = 1.0
        return valid

    def _pack_batch(self, observations):
        B = len(observations)
        b_pad = max(8, ((B + 7) // 8) * 8)          # canonical padded program for B <= 8
        S, H, W = self.num_sheet, self.max_w, self.max_h
        stocks = np.zeros((b_pad, S, H, W), dtype=np.int8)      # pre-binarized, 1/4 the DMA
        prod = np.zeros((b_pad, self.prod_dim), dtype=np.float32)
        mask = np.zeros((b_pad, self.a_pad), dtype=np.int8)
        for b, (obs_stocks, obs_products) in enumerate(observations):
            grid = np.stack([np.asarray(s) for s in obs_stocks])
            stocks[b] = (grid == -1).astype(np.int8)
            prod[b] = self._product_features(obs_products)
            mask[b, :self.num_actions] = self._valid_mask(obs_products)
        return b_pad, stocks, prod, mask

    # ---- forward passes ----
    def forward(self, observation_stocks, observation_products):
        """Single observation (matches the PyTorch module); returns (1, num_actions)."""
        return self.forward_batch([(observation_stocks, observation_products)])

    def forward_batch(self, observations):
        """observations: list of (observation_stocks, observation_products)."""
        B = len(observations)
        b_pad, stocks, prod, mask = self._pack_batch(observations)
        out = self._get_forward(b_pad)(stocks, prod, mask)
        return out[:B, :self.num_actions]

    # ---- pure-JAX reference (mirrors the kernel's bf16 rounding points) ----
    def reference_forward_batch(self, stocks_bin, prod, mask01):
        f32, bf16 = jnp.float32, jnp.bfloat16
        hp = jax.lax.Precision.HIGHEST
        B = int(stocks_bin.shape[0])
        S, H, W = self.num_sheet, self.max_w, self.max_h
        x = jnp.asarray(stocks_bin).astype(f32).reshape(B * S, 1, H, W)

        def conv(v, w, b):
            y = jax.lax.conv_general_dilated(
                v, jnp.asarray(w)[None, None, :, :], (2, 2), [(1, 1), (1, 1)],
                dimension_numbers=('NCHW', 'OIHW', 'NCHW'), precision=hp)
            return jnp.maximum(y + b, 0.0)

        h = conv(x, self.conv_w[0], self.conv_b[0])
        h = conv(h.astype(bf16).astype(f32), self.conv_w[1], self.conv_b[1])
        h = conv(h.astype(bf16).astype(f32), self.conv_w[2], self.conv_b[2])
        cnn = h.reshape(B, -1)                                    # (B, S*H3*W3), (s, oi, oj) order
        comb = jnp.concatenate([cnn, jnp.asarray(prod, f32)], axis=1).astype(bf16).astype(f32)
        x1 = jnp.maximum(jnp.dot(comb, jnp.asarray(self.fc1_w), precision=hp) + self.fc1_b, 0.0)
        logits = jnp.dot(x1.astype(bf16).astype(f32), jnp.asarray(self.fc2_w),
                         precision=hp) + self.fc2_b
        logits = jnp.where(jnp.asarray(mask01) > 0.5, logits, -1e9)
        return jax.nn.softmax(logits, axis=1)


if __name__ == "__main__":
    # Small, formula-consistent config: (20//8 + 1) == actual conv-out side (3).
    num_sheet, max_w, max_h = 2, 20, 20
    max_product_type, max_product_per_type, hidden_dim = 3, 5, 32
    B = 4

    key = jax.random.PRNGKey(0)
    kp, ks = jax.random.split(key)
    net = ActorNetworkPallas(num_sheet, max_w, max_h, max_product_type,
                             max_product_per_type, hidden_dim, kp)

    # Deterministic observations: stocks are -1 (empty) except placed items (0).
    occ = jax.random.uniform(ks, (B, num_sheet, max_w, max_h)) < 0.3
    stocks_all = np.where(np.asarray(occ), 0, -1).astype(np.int32)
    prod_sets = [
        [{'size': (3.0, 4.0), 'quantity': 2}, {'size': (5.0, 2.0), 'quantity': 0}],
        [{'size': (2.0, 2.0), 'quantity': 1}, {'size': (4.0, 6.0), 'quantity': 3},
         {'size': (1.0, 7.0), 'quantity': 0}],
        [{'size': (3.0, 3.0), 'quantity': 0}],                 # all zero -> all-valid fallback
        [{'size': (6.0, 1.0), 'quantity': 4}, {'size': (2.0, 5.0), 'quantity': 1}],
    ]
    observations = [([stocks_all[b, s] for s in range(num_sheet)], prod_sets[b])
                    for b in range(B)]

    # Batched forward and single-observation forward (PyTorch-like API).  Both share
    # ONE compiled padded program (B padded to the canonical 8).
    probs_b = jax.block_until_ready(net.forward_batch(observations))
    probs_1 = jax.block_until_ready(net.forward(observations[0][0], observations[0][1]))
    assert len(net._jitted) == 1, "expected a single canonical padded program"

    # Correctness vs the pure-JAX reference (same bf16-rounded weights/activations).
    _, stocks_p, prod_p, mask_p = net._pack_batch(observations)
    ref = jax.block_until_ready(net.reference_forward_batch(
        stocks_p[:B], prod_p[:B], mask_p[:B, :net.num_actions]))

    np.testing.assert_allclose(np.asarray(probs_b), np.asarray(ref), rtol=1e-3, atol=1e-4)
    np.testing.assert_allclose(np.asarray(probs_1), np.asarray(ref[0:1]), rtol=1e-3, atol=1e-4)
    np.testing.assert_allclose(np.asarray(probs_b).sum(axis=1), np.ones(B), rtol=1e-5, atol=1e-5)
    assert probs_b.shape == (B, num_sheet * max_product_type)
    assert probs_1.shape == (1, num_sheet * max_product_type)

    print("KERNEL_OK")
</pallas_src>

<mosaic_0001>
module attributes {stable_mosaic.version = 11 : i64} {
  func.func @_actor_kernel(%arg0: memref<2x20x8x20xi8, #tpu.memory_space<vmem>>, %arg1: memref<8x18xf32, #tpu.memory_space<vmem>>, %arg2: memref<8x128xi8, #tpu.memory_space<vmem>>, %arg3: memref<22x30xf32, #tpu.memory_space<vmem>>, %arg4: memref<12x15xf32, #tpu.memory_space<vmem>>, %arg5: memref<8x9xf32, #tpu.memory_space<vmem>>, %arg6: memref<128x128xbf16, #tpu.memory_space<vmem>>, %arg7: memref<1x128xf32, #tpu.memory_space<vmem>>, %arg8: memref<128x128xbf16, #tpu.memory_space<vmem>>, %arg9: memref<1x128xf32, #tpu.memory_space<vmem>>, %arg10: memref<8x128xf32, #tpu.memory_space<vmem>>, %arg11: memref<2x22x8x22xf32, #tpu.memory_space<vmem>>, %arg12: memref<2x12x8x12xf32, #tpu.memory_space<vmem>>, %arg13: memref<2x8x8x8xf32, #tpu.memory_space<vmem>>, %arg14: memref<8x128xf32, #tpu.memory_space<vmem>>) attributes {dimension_semantics = [], scalar_prefetch = 0 : i64, scratch_operands = 4 : i64, tpu.core_type = #tpu.core_type<tc>} {
    %cst = arith.constant 0.000000e+00 : f32
    %0 = vector.broadcast %cst : f32 to vector<2x22x8x22xf32>
    %c0 = arith.constant 0 : index
    %c0_0 = arith.constant 0 : index
    %c0_1 = arith.constant 0 : index
    %c0_2 = arith.constant 0 : index
    %1 = vector.load %arg11[%c0, %c0_0, %c0_1, %c0_2] : memref<2x22x8x22xf32, #tpu.memory_space<vmem>>, vector<2x22x8x22xf32>
    tpu.vector_store %arg11[%c0, %c0_0, %c0_1, %c0_2], %0 {strides = array<i32>} : memref<2x22x8x22xf32, #tpu.memory_space<vmem>>, vector<2x22x8x22xf32>,
    %cst_3 = arith.constant 0.000000e+00 : f32
    %2 = vector.broadcast %cst_3 : f32 to vector<2x12x8x12xf32>
    %c0_4 = arith.constant 0 : index
    %c0_5 = arith.constant 0 : index
    %c0_6 = arith.constant 0 : index
    %c0_7 = arith.constant 0 : index
    %3 = vector.load %arg12[%c0_4, %c0_5, %c0_6, %c0_7] : memref<2x12x8x12xf32, #tpu.memory_space<vmem>>, vector<2x12x8x12xf32>
    tpu.vector_store %arg12[%c0_4, %c0_5, %c0_6, %c0_7], %2 {strides = array<i32>} : memref<2x12x8x12xf32, #tpu.memory_space<vmem>>, vector<2x12x8x12xf32>,
    %cst_8 = arith.constant 0.000000e+00 : f32
    %4 = vector.broadcast %cst_8 : f32 to vector<2x8x8x8xf32>
    %c0_9 = arith.constant 0 : index
    %c0_10 = arith.constant 0 : index
    %c0_11 = arith.constant 0 : index
    %c0_12 = arith.constant 0 : index
    %5 = vector.load %arg13[%c0_9, %c0_10, %c0_11, %c0_12] : memref<2x8x8x8xf32, #tpu.memory_space<vmem>>, vector<2x8x8x8xf32>
    tpu.vector_store %arg13[%c0_9, %c0_10, %c0_11, %c0_12], %4 {strides = array<i32>} : memref<2x8x8x8xf32, #tpu.memory_space<vmem>>, vector<2x8x8x8xf32>,
    %cst_13 = arith.constant 0.000000e+00 : f32
    %6 = vector.broadcast %cst_13 : f32 to vector<8x128xf32>
    %c0_14 = arith.constant 0 : index
    %c0_15 = arith.constant 0 : index
    %7 = vector.load %arg14[%c0_14, %c0_15] : memref<8x128xf32, #tpu.memory_space<vmem>>, vector<8x128xf32>
    tpu.vector_store %arg14[%c0_14, %c0_15], %6 {strides = array<i32>} : memref<8x128xf32, #tpu.memory_space<vmem>>, vector<8x128xf32>,
    %c0_16 = arith.constant 0 : index
    %c0_17 = arith.constant 0 : index
    %c0_18 = arith.constant 0 : index
    %c0_19 = arith.constant 0 : index
    %8 = vector.load %arg0[%c0_16, %c0_17, %c0_18, %c0_19] : memref<2x20x8x20xi8, #tpu.memory_space<vmem>>, vector<2x20x8x20xi8>
    %9 = arith.sitofp %8 : vector<2x20x8x20xi8> to vector<2x20x8x20xf32>
    %c0_20 = arith.constant 0 : index
    %c1 = arith.constant 1 : index
    %c0_21 = arith.constant 0 : index
    %c1_22 = arith.constant 1 : index
    %10 = vector.load %arg11[%c0_20, %c1, %c0_21, %c1_22] : memref<2x22x8x22xf32, #tpu.memory_space<vmem>>, vector<2x20x8x20xf32>
    tpu.vector_store %arg11[%c0_20, %c1, %c0_21, %c1_22], %9 {strides = array<i32>} : memref<2x22x8x22xf32, #tpu.memory_space<vmem>>, vector<2x20x8x20xf32>,
    %c0_23 = arith.constant 0 : index
    %c0_24 = arith.constant 0 : index
    %c0_25 = arith.constant 0 : index
    %c0_26 = arith.constant 0 : index
    %11 = vector.load %arg11[%c0_23, %c0_24, %c0_25, %c0_26] : memref<2x22x8x22xf32, #tpu.memory_space<vmem>>, vector<2x22x8x22xf32>
    %12 = vector.shape_cast %11 : vector<2x22x8x22xf32> to vector<352x22xf32>
    %c0_27 = arith.constant 0 : index
    %c0_28 = arith.constant 0 : index
    %13 = vector.load %arg3[%c0_27, %c0_28] : memref<22x30xf32, #tpu.memory_space<vmem>>, vector<22x30xf32>
    %cst_29 = arith.constant dense<0.000000e+00> : vector<352x30xf32>
    %14 = tpu.matmul %12, %13, %cst_29 {dimension_numbers = #tpu.dot_dimension_numbers<[1], [0], [0], [1], [0, 0, 1, 1], [], []>} : vector<352x22xf32>, vector<22x30xf32>, vector<352x30xf32> -> vector<352x30xf32>
    %15 = vector.shape_cast %14 : vector<352x30xf32> to vector<2x11x2x8x30xf32>
    %16 = vector.extract_strided_slice %15 {offsets = [0, 0, 0, 0, 0], sizes = [2, 10, 1, 8, 10], strides = [1, 1, 1, 1, 1]} : vector<2x11x2x8x30xf32> to vector<2x10x1x8x10xf32>
    %17 = vector.shape_cast %16 : vector<2x10x1x8x10xf32> to vector<2x10x8x10xf32>
    %18 = vector.extract_strided_slice %15 {offsets = [0, 0, 1, 0, 10], sizes = [2, 10, 1, 8, 10], strides = [1, 1, 1, 1, 1]} : vector<2x11x2x8x30xf32> to vector<2x10x1x8x10xf32>
    %19 = vector.shape_cast %18 : vector<2x10x1x8x10xf32> to vector<2x10x8x10xf32>
    %20 = vector.extract_strided_slice %15 {offsets = [0, 1, 0, 0, 20], sizes = [2, 10, 1, 8, 10], strides = [1, 1, 1, 1, 1]} : vector<2x11x2x8x30xf32> to vector<2x10x1x8x10xf32>
    %21 = vector.shape_cast %20 : vector<2x10x1x8x10xf32> to vector<2x10x8x10xf32>
    %22 = arith.addf %17, %19 : vector<2x10x8x10xf32>
    %23 = arith.addf %22, %21 : vector<2x10x8x10xf32>
    %cst_30 = arith.constant 0.0886921882 : f32
    %24 = vector.broadcast %cst_30 : f32 to vector<2x10x8x10xf32>
    %25 = arith.addf %23, %24 : vector<2x10x8x10xf32>
    %cst_31 = arith.constant 0.000000e+00 : f32
    %26 = vector.broadcast %cst_31 : f32 to vector<2x10x8x10xf32>
    %27 = arith.maximumf %25, %26 : vector<2x10x8x10xf32>
    %28 = arith.truncf %27 : vector<2x10x8x10xf32> to vector<2x10x8x10xbf16>
    %29 = arith.extf %28 : vector<2x10x8x10xbf16> to vector<2x10x8x10xf32>
    %c0_32 = arith.constant 0 : index
    %c1_33 = arith.constant 1 : index
    %c0_34 = arith.constant 0 : index
    %c1_35 = arith.constant 1 : index
    %30 = vector.load %arg12[%c0_32, %c1_33, %c0_34, %c1_35] : memref<2x12x8x12xf32, #tpu.memory_space<vmem>>, vector<2x10x8x10xf32>
    tpu.vector_store %arg12[%c0_32, %c1_33, %c0_34, %c1_35], %29 {strides = array<i32>} : memref<2x12x8x12xf32, #tpu.memory_space<vmem>>, vector<2x10x8x10xf32>,
    %c0_36 = arith.constant 0 : index
    %c0_37 = arith.constant 0 : index
    %c0_38 = arith.constant 0 : index
    %c0_39 = arith.constant 0 : index
    %31 = vector.load %arg12[%c0_36, %c0_37, %c0_38, %c0_39] : memref<2x12x8x12xf32, #tpu.memory_space<vmem>>, vector<2x12x8x12xf32>
    %32 = vector.shape_cast %31 : vector<2x12x8x12xf32> to vector<192x12xf32>
    %c0_40 = arith.constant 0 : index
    %c0_41 = arith.constant 0 : index
    %33 = vector.load %arg4[%c0_40, %c0_41] : memref<12x15xf32, #tpu.memory_space<vmem>>, vector<12x15xf32>
    %cst_42 = arith.constant dense<0.000000e+00> : vector<192x15xf32>
    %34 = tpu.matmul %32, %33, %cst_42 {dimension_numbers = #tpu.dot_dimension_numbers<[1], [0], [0], [1], [0, 0, 1, 1], [], []>} : vector<192x12xf32>, vector<12x15xf32>, vector<192x15xf32> -> vector<192x15xf32>
    %35 = vector.shape_cast %34 : vector<192x15xf32> to vector<2x6x2x8x15xf32>
    %36 = vector.extract_strided_slice %35 {offsets = [0, 0, 0, 0, 0], sizes = [2, 5, 1, 8, 5], strides = [1, 1, 1, 1, 1]} : vector<2x6x2x8x15xf32> to vector<2x5x1x8x5xf32>
    %37 = vector.shape_cast %36 : vector<2x5x1x8x5xf32> to vector<2x5x8x5xf32>
    %38 = vector.extract_strided_slice %35 {offsets = [0, 0, 1, 0, 5], sizes = [2, 5, 1, 8, 5], strides = [1, 1, 1, 1, 1]} : vector<2x6x2x8x15xf32> to vector<2x5x1x8x5xf32>
    %39 = vector.shape_cast %38 : vector<2x5x1x8x5xf32> to vector<2x5x8x5xf32>
    %40 = vector.extract_strided_slice %35 {offsets = [0, 1, 0, 0, 10], sizes = [2, 5, 1, 8, 5], strides = [1, 1, 1, 1, 1]} : vector<2x6x2x8x15xf32> to vector<2x5x1x8x5xf32>
    %41 = vector.shape_cast %40 : vector<2x5x1x8x5xf32> to vector<2x5x8x5xf32>
    %42 = arith.addf %37, %39 : vector<2x5x8x5xf32>
    %43 = arith.addf %42, %41 : vector<2x5x8x5xf32>
    %cst_43 = arith.constant 0.232911825 : f32
    %44 = vector.broadcast %cst_43 : f32 to vector<2x5x8x5xf32>
    %45 = arith.addf %43, %44 : vector<2x5x8x5xf32>
    %cst_44 = arith.constant 0.000000e+00 : f32
    %46 = vector.broadcast %cst_44 : f32 to vector<2x5x8x5xf32>
    %47 = arith.maximumf %45, %46 : vector<2x5x8x5xf32>
    %48 = arith.truncf %47 : vector<2x5x8x5xf32> to vector<2x5x8x5xbf16>
    %49 = arith.extf %48 : vector<2x5x8x5xbf16> to vector<2x5x8x5xf32>
    %c0_45 = arith.constant 0 : index
    %c1_46 = arith.constant 1 : index
    %c0_47 = arith.constant 0 : index
    %c1_48 = arith.constant 1 : index
    %50 = vector.load %arg13[%c0_45, %c1_46, %c0_47, %c1_48] : memref<2x8x8x8xf32, #tpu.memory_space<vmem>>, vector<2x5x8x5xf32>
    tpu.vector_store %arg13[%c0_45, %c1_46, %c0_47, %c1_48], %49 {strides = array<i32>} : memref<2x8x8x8xf32, #tpu.memory_space<vmem>>, vector<2x5x8x5xf32>,
    %c0_49 = arith.constant 0 : index
    %c0_50 = arith.constant 0 : index
    %c0_51 = arith.constant 0 : index
    %c0_52 = arith.constant 0 : index
    %51 = vector.load %arg13[%c0_49, %c0_50, %c0_51, %c0_52] : memref<2x8x8x8xf32, #tpu.memory_space<vmem>>, vector<2x8x8x8xf32>
    %52 = vector.shape_cast %51 : vector<2x8x8x8xf32> to vector<128x8xf32>
    %c0_53 = arith.constant 0 : index
    %c0_54 = arith.constant 0 : index
    %53 = vector.load %arg5[%c0_53, %c0_54] : memref<8x9xf32, #tpu.memory_space<vmem>>, vector<8x9xf32>
    %cst_55 = arith.constant dense<0.000000e+00> : vector<128x9xf32>
    %54 = tpu.matmul %52, %53, %cst_55 {dimension_numbers = #tpu.dot_dimension_numbers<[1], [0], [0], [1], [0, 0, 1, 1], [], []>} : vector<128x8xf32>, vector<8x9xf32>, vector<128x9xf32> -> vector<128x9xf32>
    %55 = vector.shape_cast %54 : vector<128x9xf32> to vector<2x4x2x8x9xf32>
    %56 = vector.extract_strided_slice %55 {offsets = [0, 0, 0, 0, 0], sizes = [2, 3, 1, 8, 3], strides = [1, 1, 1, 1, 1]} : vector<2x4x2x8x9xf32> to vector<2x3x1x8x3xf32>
    %57 = vector.shape_cast %56 : vector<2x3x1x8x3xf32> to vector<2x3x8x3xf32>
    %58 = vector.extract_strided_slice %55 {offsets = [0, 0, 1, 0, 3], sizes = [2, 3, 1, 8, 3], strides = [1, 1, 1, 1, 1]} : vector<2x4x2x8x9xf32> to vector<2x3x1x8x3xf32>
    %59 = vector.shape_cast %58 : vector<2x3x1x8x3xf32> to vector<2x3x8x3xf32>
    %60 = vector.extract_strided_slice %55 {offsets = [0, 1, 0, 0, 6], sizes = [2, 3, 1, 8, 3], strides = [1, 1, 1, 1, 1]} : vector<2x4x2x8x9xf32> to vector<2x3x1x8x3xf32>
    %61 = vector.shape_cast %60 : vector<2x3x1x8x3xf32> to vector<2x3x8x3xf32>
    %62 = arith.addf %57, %59 : vector<2x3x8x3xf32>
    %63 = arith.addf %62, %61 : vector<2x3x8x3xf32>
    %cst_56 = arith.constant -0.0885763168 : f32
    %64 = vector.broadcast %cst_56 : f32 to vector<2x3x8x3xf32>
    %65 = arith.addf %63, %64 : vector<2x3x8x3xf32>
    %cst_57 = arith.constant 0.000000e+00 : f32
    %66 = vector.broadcast %cst_57 : f32 to vector<2x3x8x3xf32>
    %67 = arith.maximumf %65, %66 : vector<2x3x8x3xf32>
    %68 = vector.extract_strided_slice %67 {offsets = [0, 0, 0, 0], sizes = [1, 1, 8, 3], strides = [1, 1, 1, 1]} : vector<2x3x8x3xf32> to vector<1x1x8x3xf32>
    %69 = vector.shape_cast %68 : vector<1x1x8x3xf32> to vector<8x3xf32>
    %c0_58 = arith.constant 0 : index
    %c0_59 = arith.constant 0 : index
    %70 = vector.load %arg14[%c0_58, %c0_59] : memref<8x128xf32, #tpu.memory_space<vmem>>, vector<8x3xf32>
    tpu.vector_store %arg14[%c0_58, %c0_59], %69 {strides = array<i32>} : memref<8x128xf32, #tpu.memory_space<vmem>>, vector<8x3xf32>,
    %71 = vector.extract_strided_slice %67 {offsets = [0, 1, 0, 0], sizes = [1, 1, 8, 3], strides = [1, 1, 1, 1]} : vector<2x3x8x3xf32> to vector<1x1x8x3xf32>
    %72 = vector.shape_cast %71 : vector<1x1x8x3xf32> to vector<8x3xf32>
    %c0_60 = arith.constant 0 : index
    %c3 = arith.constant 3 : index
    %73 = vector.load %arg14[%c0_60, %c3] : memref<8x128xf32, #tpu.memory_space<vmem>>, vector<8x3xf32>
    tpu.vector_store %arg14[%c0_60, %c3], %72 {strides = array<i32>} : memref<8x128xf32, #tpu.memory_space<vmem>>, vector<8x3xf32>,
    %74 = vector.extract_strided_slice %67 {offsets = [0, 2, 0, 0], sizes = [1, 1, 8, 3], strides = [1, 1, 1, 1]} : vector<2x3x8x3xf32> to vector<1x1x8x3xf32>
    %75 = vector.shape_cast %74 : vector<1x1x8x3xf32> to vector<8x3xf32>
    %c0_61 = arith.constant 0 : index
    %c6 = arith.constant 6 : index
    %76 = vector.load %arg14[%c0_61, %c6] : memref<8x128xf32, #tpu.memory_space<vmem>>, vector<8x3xf32>
    tpu.vector_store %arg14[%c0_61, %c6], %75 {strides = array<i32>} : memref<8x128xf32, #tpu.memory_space<vmem>>, vector<8x3xf32>,
    %77 = vector.extract_strided_slice %67 {offsets = [1, 0, 0, 0], sizes = [1, 1, 8, 3], strides = [1, 1, 1, 1]} : vector<2x3x8x3xf32> to vector<1x1x8x3xf32>
    %78 = vector.shape_cast %77 : vector<1x1x8x3xf32> to vector<8x3xf32>
    %c0_62 = arith.constant 0 : index
    %c9 = arith.constant 9 : index
    %79 = vector.load %arg14[%c0_62, %c9] : memref<8x128xf32, #tpu.memory_space<vmem>>, vector<8x3xf32>
    tpu.vector_store %arg14[%c0_62, %c9], %78 {strides = array<i32>} : memref<8x128xf32, #tpu.memory_space<vmem>>, vector<8x3xf32>,
    %80 = vector.extract_strided_slice %67 {offsets = [1, 1, 0, 0], sizes = [1, 1, 8, 3], strides = [1, 1, 1, 1]} : vector<2x3x8x3xf32> to vector<1x1x8x3xf32>
    %81 = vector.shape_cast %80 : vector<1x1x8x3xf32> to vector<8x3xf32>
    %c0_63 = arith.constant 0 : index
    %c12 = arith.constant 12 : index
    %82 = vector.load %arg14[%c0_63, %c12] : memref<8x128xf32, #tpu.memory_space<vmem>>, vector<8x3xf32>
    tpu.vector_store %arg14[%c0_63, %c12], %81 {strides = array<i32>} : memref<8x128xf32, #tpu.memory_space<vmem>>, vector<8x3xf32>,
    %83 = vector.extract_strided_slice %67 {offsets = [1, 2, 0, 0], sizes = [1, 1, 8, 3], strides = [1, 1, 1, 1]} : vector<2x3x8x3xf32> to vector<1x1x8x3xf32>
    %84 = vector.shape_cast %83 : vector<1x1x8x3xf32> to vector<8x3xf32>
    %c0_64 = arith.constant 0 : index
    %c15 = arith.constant 15 : index
    %85 = vector.load %arg14[%c0_64, %c15] : memref<8x128xf32, #tpu.memory_space<vmem>>, vector<8x3xf32>
    tpu.vector_store %arg14[%c0_64, %c15], %84 {strides = array<i32>} : memref<8x128xf32, #tpu.memory_space<vmem>>, vector<8x3xf32>,
    %c0_65 = arith.constant 0 : index
    %c0_66 = arith.constant 0 : index
    %86 = vector.load %arg1[%c0_65, %c0_66] : memref<8x18xf32, #tpu.memory_space<vmem>>, vector<8x18xf32>
    %c0_67 = arith.constant 0 : index
    %c18 = arith.constant 18 : index
    %87 = vector.load %arg14[%c0_67, %c18] : memref<8x128xf32, #tpu.memory_space<vmem>>, vector<8x18xf32>
    tpu.vector_store %arg14[%c0_67, %c18], %86 {strides = array<i32>} : memref<8x128xf32, #tpu.memory_space<vmem>>, vector<8x18xf32>,
    %c0_68 = arith.constant 0 : index
    %c0_69 = arith.constant 0 : index
    %88 = vector.load %arg14[%c0_68, %c0_69] : memref<8x128xf32, #tpu.memory_space<vmem>>, vector<8x128xf32>
    %89 = arith.truncf %88 : vector<8x128xf32> to vector<8x128xbf16>
    %c0_70 = arith.constant 0 : index
    %c0_71 = arith.constant 0 : index
    %90 = vector.load %arg6[%c0_70, %c0_71] : memref<128x128xbf16, #tpu.memory_space<vmem>>, vector<128x128xbf16>
    %cst_72 = arith.constant dense<0.000000e+00> : vector<8x128xf32>
    %91 = tpu.matmul %89, %90, %cst_72 {dimension_numbers = #tpu.dot_dimension_numbers<[1], [0], [0], [1], [0, 0, 1, 1], [], []>} : vector<8x128xbf16>, vector<128x128xbf16>, vector<8x128xf32> -> vector<8x128xf32>
    %c0_73 = arith.constant 0 : index
    %c0_74 = arith.constant 0 : index
    %92 = vector.load %arg7[%c0_73, %c0_74] : memref<1x128xf32, #tpu.memory_space<vmem>>, vector<1x128xf32>
    %93 = vector.broadcast %92 : vector<1x128xf32> to vector<8x128xf32>
    %94 = arith.addf %91, %93 : vector<8x128xf32>
    %cst_75 = arith.constant 0.000000e+00 : f32
    %95 = vector.broadcast %cst_75 : f32 to vector<8x128xf32>
    %96 = arith.maximumf %94, %95 : vector<8x128xf32>
    %97 = arith.truncf %96 : vector<8x128xf32> to vector<8x128xbf16>
    %c0_76 = arith.constant 0 : index
    %c0_77 = arith.constant 0 : index
    %98 = vector.load %arg8[%c0_76, %c0_77] : memref<128x128xbf16, #tpu.memory_space<vmem>>, vector<128x128xbf16>
    %cst_78 = arith.constant dense<0.000000e+00> : vector<8x128xf32>
    %99 = tpu.matmul %97, %98, %cst_78 {dimension_numbers = #tpu.dot_dimension_numbers<[1], [0], [0], [1], [0, 0, 1, 1], [], []>} : vector<8x128xbf16>, vector<128x128xbf16>, vector<8x128xf32> -> vector<8x128xf32>
    %c0_79 = arith.constant 0 : index
    %c0_80 = arith.constant 0 : index
    %100 = vector.load %arg9[%c0_79, %c0_80] : memref<1x128xf32, #tpu.memory_space<vmem>>, vector<1x128xf32>
    %101 = vector.broadcast %100 : vector<1x128xf32> to vector<8x128xf32>
    %102 = arith.addf %99, %101 : vector<8x128xf32>
    %c0_81 = arith.constant 0 : index
    %c0_82 = arith.constant 0 : index
    %103 = vector.load %arg2[%c0_81, %c0_82] : memref<8x128xi8, #tpu.memory_space<vmem>>, vector<8x128xi8>
    %c0_i8 = arith.constant 0 : i8
    %104 = vector.broadcast %c0_i8 : i8 to vector<8x128xi8>
    %105 = arith.cmpi ne, %103, %104 : vector<8x128xi8>
    %cst_83 = arith.constant -1.000000e+09 : f32
    %106 = vector.broadcast %cst_83 : f32 to vector<8x128xf32>
    %107 = arith.select %105, %102, %106 : vector<8x128xi1>, vector<8x128xf32>
    %cst_84 = arith.constant dense<0xFF800000> : vector<8xf32>
    %108 = vector.multi_reduction <maximumf>, %107, %cst_84 [1] : vector<8x128xf32> to vector<8xf32>
    %109 = vector.shape_cast %108 : vector<8xf32> to vector<8x1xf32>
    %110 = vector.broadcast %109 : vector<8x1xf32> to vector<8x128xf32>
    %111 = arith.subf %107, %110 : vector<8x128xf32>
    %112 = math.exp %111 : vector<8x128xf32>
    %cst_85 = arith.constant dense<0.000000e+00> : vector<8xf32>
    %113 = vector.multi_reduction <add>, %112, %cst_85 [1] : vector<8x128xf32> to vector<8xf32>
    %114 = vector.shape_cast %113 : vector<8xf32> to vector<8x1xf32>
    %115 = tpu.reciprocal %114 : vector<8x1xf32> -> vector<8x1xf32>
    %116 = vector.broadcast %115 : vector<8x1xf32> to vector<8x128xf32>
    %117 = arith.mulf %112, %116 : vector<8x128xf32>
    %c0_86 = arith.constant 0 : index
    %c0_87 = arith.constant 0 : index
    %118 = vector.load %arg10[%c0_86, %c0_87] : memref<8x128xf32, #tpu.memory_space<vmem>>, vector<8x128xf32>
    tpu.vector_store %arg10[%c0_86, %c0_87], %117 {strides = array<i32>} : memref<8x128xf32, #tpu.memory_space<vmem>>, vector<8x128xf32>,
    return
  }
}

</mosaic_0001>

<bundles_post_ra>
// kernel: fwd.1
= control target key start
LH: loop header
LB: loop body
LE: loop exit
PB: predicated region body
PF: predicated region fallthrough
CT: control target
= control target key end

     0   :  { %15 = vsyncpa [#allocation7], 0  ;;  %s3312_s0 = inlined_call_operand.hbm [shape: s8[2,20,8,20], index: 0, kind: input, shape index: {}]   ;;  %s3313_s1 = inlined_call_operand.hbm [shape: f32[8,18], index: 1, kind: input, shape index: {}]   ;;  %s3314_s2 = inlined_call_operand.vmem [shape: s8[8,128], index: 2, kind: input, shape index: {}]   ;;  %s3315_s3 = inlined_call_operand.hbm [shape: f32[22,30], index: 3, kind: input, shape index: {}]   ;;  %s3316_s4 = inlined_call_operand.hbm [shape: f32[12,15], index: 4, kind: input, shape index: {}]   ;;  %s3317_s5 = inlined_call_operand.hbm [shape: f32[8,9], index: 5, kind: input, shape index: {}]   ;;  %s3318_s6 = inlined_call_operand.hbm [shape: bf16[128,128], index: 6, kind: input, shape index: {}]   ;;  %s3319_s7 = inlined_call_operand.vmem [shape: f32[1,128], index: 7, kind: input, shape index: {}]   ;;  %s3320_s8 = inlined_call_operand.hbm [shape: bf16[128,128], index: 8, kind: input, shape index: {}]   ;;  %s3321_s9 = inlined_call_operand.vmem [shape: f32[1,128], index: 9, kind: input, shape index: {}]   ;;  %s3322_s10 = inlined_call_operand.hbm [shape: f32[8,128], index: 10, kind: output, shape index: {}]  }
   0x1   :  { %16 = vsyncpa [#allocation10], 0 }
   0x2   :  { %17 = vsyncpa [#allocation13], 0 }
   0x3   :  { %18 = vsyncpa [#allocation16], 0  ;;  %s38_s15 = sshll.u32 %s3313_s1, 4  ;;  %s39_s15 = int_to_ptr.hbm [resolvable:$true] %s38_s15 }
   0x4   :  { %19 = vsyncpa [#allocation8], 0  ;;  %s2610_s16 = smov [#allocation9]   ;;  %s63_s20 = sshll.u32 %s3316_s4, 4  ;;  %s64_s20 = int_to_ptr.hbm [resolvable:$true] %s63_s20 }
   0x5   :  { %s40_s17 = sshll.u32 %s2610_s16, 4  ;;  %s2611_s21 = smov [#allocation12]   ;;  %s41_s17 = int_to_ptr.vmem [resolvable:$true] %s40_s17 }
   0x6   :  { %43 = dma.hbm_to_vmem [thread:$0]  %s39_s15, 128, %s41_s17, [#allocation10]  }
   0x7   :  { %s65_s22 = sshll.u32 %s2611_s21, 4  ;;  %s87_s25 = sshll.u32 %s3318_s6, 4  ;;  %s66_s22 = int_to_ptr.vmem [resolvable:$true] %s65_s22  ;;  %s88_s25 = int_to_ptr.hbm [resolvable:$true] %s87_s25 }
   0x8   :  { %s2612_s1 = smov 128   ;;  %s2613_s26 = smov 8  }
   0x9   :  { %71 = dma.hbm_to_vmem [thread:$0]  %s64_s20, 256, %s66_s22, [#allocation13], %s2612_s1, %s2612_s1, %s2613_s26  }
   0xa   :  { %s2614_s27 = smov [#allocation15]   ;;  %s24_s11 = sshll.u32 %s3312_s0, 4  ;;  %s25_s11 = int_to_ptr.hbm [resolvable:$true] %s24_s11 }
   0xb   :  { %s89_s28 = sshll.u32 %s2614_s27, 4  ;;  %s2615_s4 = smov 64   ;;  %s90_s28 = int_to_ptr.vmem [resolvable:$true] %s89_s28 }
   0xc   :  { %s2616_s12 = smov 4   ;;  %s2617_s6 = smov [#allocation6]  }
   0xd   :  { %95 = dma.hbm_to_vmem [thread:$0]  %s88_s25, 1024, %s90_s28, [#allocation16], %s2615_s4, %s2615_s4, %s2616_s12  }
   0xe   :  { %s26_s13 = sshll.u32 %s2617_s6, 4  ;;  %s2618_s14 = smov 32   ;;  %s27_s13 = int_to_ptr.vmem [resolvable:$true] %s26_s13 }
   0xf   :  { %s2619_s15 = smov 2   ;;  %s50_s18 = sshll.u32 %s3315_s3, 4  ;;  %s51_s18 = int_to_ptr.hbm [resolvable:$true] %s50_s18 }
  0x10   :  { %32 = dma.hbm_to_vmem [thread:$0]  %s25_s11, 1280, %s27_s13, [#allocation7], %s2618_s14, %s2618_s14, %s2619_s15  }
  0x11   :  { %s2620_s19 = smov [#allocation11]   ;;  %s77_s22 = sshll.u32 %s3317_s5, 4  ;;  %s78_s22 = int_to_ptr.hbm [resolvable:$true] %s77_s22 }
  0x12   :  { %s52_s0 = sshll.u32 %s2620_s19, 4  ;;  %s2621_s23 = smov [#allocation14]   ;;  %s53_s0 = int_to_ptr.vmem [resolvable:$true] %s52_s0 }
  0x13   :  { %58 = dma.hbm_to_vmem [thread:$0]  %s51_s18, 384, %s53_s0, [#allocation10], %s2612_s1, %s2612_s1, %s2613_s26  }
  0x14   :  { %s79_s24 = sshll.u32 %s2621_s23, 4  ;;  %s102_s28 = sshll.u32 %s3320_s8, 4  ;;  %s80_s24 = int_to_ptr.vmem [resolvable:$true] %s79_s24  ;;  %s103_s28 = int_to_ptr.hbm [resolvable:$true] %s102_s28 }
  0x15   :  { %82 = dma.hbm_to_vmem [thread:$0]  %s78_s22, 128, %s80_s24, [#allocation13]  }
  0x16   :  { %s2622_s3 = smov [#allocation17]  }
  0x17   :  { %s104_s29 = sshll.u32 %s2622_s3, 4  ;;  %s105_s29 = int_to_ptr.vmem [resolvable:$true] %s104_s29 }
  0x18   :  { %110 = dma.hbm_to_vmem [thread:$0]  %s103_s28, 1024, %s105_s29, [#allocation16], %s2615_s4, %s2615_s4, %s2616_s12  }
  0x19   :  { %2600 = dma.done.wait [#allocation7], 1280  }
  0x1a   :  { %2601 = vsyncadd [#allocation7], 4294966016 }
  0x1b   :  { %2602 = dma.done.wait [#allocation10], 512  }
  0x1c   :  { %2603 = vsyncadd [#allocation10], 4294966784 }
  0x1d   :  { %2604 = dma.done.wait [#allocation13], 384  }
  0x1e   :  { %2605 = vsyncadd [#allocation13], 4294966912 }
  0x1f   :  { %2606 = dma.done.wait [#allocation16], 2048  }
  0x20   :  { %2607 = vsyncadd [#allocation16], 4294965248  ;;  %v2267_v0 = vld [vmem:[#allocation6] sm:$0xff]   ;;  %v2355_v1 = vld [vmem:[#allocation6 + $0x8] sm:$0xf]   ;;  %s2623_s5 = smov 1  }
  0x21   :  { %v2268_v2 = vunpack.c.0.s8 %v2267_v0  ;;  %v2272_v3 = vunpack.c.2.s8 %v2267_v0  ;;  %v2276_v4 = vunpack.c.0.s8 %v2355_v1  ;;  %v2269_v8 = vunpack.c.1.s8 %v2267_v0  ;;  %v599_v10 = vld [vmem:[#allocation11 + $0x10] sm:$0x3f]  ;;  %v598_v12 = vld [vmem:[#allocation11 + $0x8] sm:$0xff]  ;;  %v597_v13 = vld [vmem:[#allocation11] sm:$0xff]  ;;  %s2625_s8 = smov 118   ;;  %s2626_s1 = smov 108  }
  0x22   :  { %v2273_v9 = vunpack.c.3.s8 %v2267_v0  ;;  %v2277_v11 = vunpack.c.1.s8 %v2355_v1  ;;  %vm732_vm0 = vcmask 1045504   ;;  %vm143_vm1 = vcmask 179200   ;;  %v2356_v17 = vld [vmem:[#allocation6 + $0xc] sm:$0xff]   ;;  %v2358_v24 = vld [vmem:[#allocation6 + $0x14] sm:$0xff]   ;;  %v2360_v37 = vld [vmem:[#allocation6 + $0x1c] sm:$0xff]   ;;  %s2627_s26 = smov 123  }
  0x23   :  { %v311_v5 = vcvt.s32.f32 %v2268_v2  ;;  %v313_v6 = vcvt.s32.f32 %v2272_v3  ;;  %v315_v7 = vcvt.s32.f32 %v2276_v4  ;;  %2100 = vmatpush.msk.msra.mxu0 %vm732_vm0, %v599_v10  ;;  %2347 = vmatpush.msk.msra.mxu3 %vm732_vm0, %v599_v10  ;;  %v312_v14 = vcvt.s32.f32 %v2269_v8  ;;  %v2365_v40 = vld [vmem:[#allocation6 + $0x30] sm:$0xff]   ;;  %v2829_v49 = vld [vmem:[#allocation6 + $0x24] sm:$0xff]   ;;  %s2628_s30 = smov 125   ;;  %s2629_s11 = smov 122  }
  0x24   :  { %2346 = vmatpush.msk.msra.mxu2 %vm732_vm0, %v599_v10  ;;  %v314_v15 = vcvt.s32.f32 %v2273_v9  ;;  %v2624_v16 = vmov 0.0   ;;  %v316_v18 = vcvt.s32.f32 %v2277_v11  ;;  %v2280_v19 = vunpack.c.0.s8 %v2356_v17  ;;  %v2364_v11 = vld [vmem:[#allocation6 + $0x2c] sm:$0xf]   ;;  %s2630_s4 = smov 6   ;;  %s2631_s12 = smov 3  }
  0x25   :  { %391 = vrot.lane.b32.xlu0 %v311_v5, %s2623_s5  ;;  %395 = vrot.lane.b32.xlu1 %v313_v6, %s2623_s5  ;;  %145 = vst.msk [vmem:[#allocation2 + $0x8] sm:$0xff] %vm143_vm1, %v2624_v16  ;;  %v2281_v20 = vunpack.c.1.s8 %v2356_v17  ;;  %v2284_v21 = vunpack.c.2.s8 %v2356_v17  ;;  %v2285_v26 = vunpack.c.3.s8 %v2356_v17  ;;  %v2288_v27 = vunpack.c.0.s8 %v2358_v24  ;;  %v2367_v5 = vld [vmem:[#allocation6 + $0x38] sm:$0xff]   ;;  %s2632_s6 = smov 9   ;;  %s2633_s13 = smov 18  }
  0x26   :  { %399 = vrot.lane.b32.xlu2 %v315_v7, %s2623_s5  ;;  %750 = vmatpush.msra.mxu0 %v598_v12  ;;  %144 = vst.msk [vmem:[#allocation2] sm:$0xff] %vm143_vm1, %v2624_v16  ;;  %v317_v22 = vcvt.s32.f32 %v2280_v19  ;;  %v2289_v28 = vunpack.c.1.s8 %v2358_v24  ;;  %v2292_v32 = vunpack.c.2.s8 %v2358_v24  ;;  %v2293_v33 = vunpack.c.3.s8 %v2358_v24  ;;  %s2634_s14 = smov 12   ;;  %s2635_s15 = smov 15  }
  0x27   :  { %2349 = vmatpush.msra.mxu3 %v598_v12  ;;  %2348 = vmatpush.msra.mxu2 %v598_v12  ;;  %146 = vst.msk [vmem:[#allocation2 + $0x10] sm:$0xff] %vm143_vm1, %v2624_v16  ;;  %v318_v23 = vcvt.s32.f32 %v2281_v20  ;;  %v319_v25 = vcvt.s32.f32 %v2284_v21  ;;  %v320_v29 = vcvt.s32.f32 %v2285_v26  ;;  %v321_v30 = vcvt.s32.f32 %v2288_v27  ;;  %s2087_s22 = sshll.u32 %s3322_s10, 4  ;;  %s2088_s22 = int_to_ptr.hbm [resolvable:$true] %s2087_s22 }
  0x28   :  { %751 = vmatpush.msra.mxu0 %v597_v13  ;;  %147 = vst.msk [vmem:[#allocation2 + $0x18] sm:$0xff] %vm143_vm1, %v2624_v16  ;;  %v322_v31 = vcvt.s32.f32 %v2289_v28  ;;  %v323_v34 = vcvt.s32.f32 %v2292_v32  ;;  %v324_v35 = vcvt.s32.f32 %v2293_v33  ;;  %v2297_v38 = vunpack.c.1.s8 %v2360_v37 }
  0x29   :  { %2351 = vmatpush.msra.mxu3 %v597_v13  ;;  %2350 = vmatpush.msra.mxu2 %v597_v13  ;;  %148 = vst.msk [vmem:[#allocation2 + $0x20] sm:$0xff] %vm143_vm1, %v2624_v16  ;;  %v2316_v41 = vunpack.c.0.s8 %v2365_v40  ;;  %v2296_v43 = vunpack.c.0.s8 %v2360_v37  ;;  %v2301_v44 = vunpack.c.3.s8 %v2360_v37  ;;  %v2317_v45 = vunpack.c.1.s8 %v2365_v40 }
  0x2a   :  { %149 = vst.msk [vmem:[#allocation2 + $0x28] sm:$0xff] %vm143_vm1, %v2624_v16  ;;  %v326_v39 = vcvt.s32.f32 %v2297_v38  ;;  %vm512_vm2 = vcmask 171016   ;;  %v2304_v51 = vunpack.c.0.s8 %v2829_v49  ;;  %v2300_v55 = vunpack.c.2.s8 %v2360_v37 }
  0x2b   :  { %150 = vst.msk [vmem:[#allocation2 + $0x30] sm:$0xff] %vm143_vm1, %v2624_v16  ;;  %v335_v42 = vcvt.s32.f32 %v2316_v41  ;;  %v325_v46 = vcvt.s32.f32 %v2296_v43  ;;  %v328_v47 = vcvt.s32.f32 %v2301_v44  ;;  %v336_v48 = vcvt.s32.f32 %v2317_v45 }
  0x2c   :  { %151 = vst.msk [vmem:[#allocation2 + $0x38] sm:$0xff] %vm143_vm1, %v2624_v16  ;;  %v329_v52 = vcvt.s32.f32 %v2304_v51  ;;  %v327_v57 = vcvt.s32.f32 %v2300_v55  ;;  %v2321_v63 = vunpack.c.3.s8 %v2365_v40  ;;  %v2308_v0 = vunpack.c.2.s8 %v2829_v49 }
  0x2d   :  { %393 = vrot.lane.b32.xlu0 %v312_v14, %s2623_s5  ;;  %397 = vrot.lane.b32.xlu1 %v314_v15, %s2623_s5  ;;  %152 = vst.msk [vmem:[#allocation2 + $0x40] sm:$0xff] %vm143_vm1, %v2624_v16  ;;  %v553_v36 = vld [vmem:[#allocation2] sm:$0xff]  ;;  %v2324_v7 = vunpack.c.0.s8 %v2367_v5  ;;  %v2320_v10 = vunpack.c.2.s8 %v2365_v40  ;;  %v2312_v13 = vunpack.c.0.s8 %v2364_v11  ;;  %v2305_v19 = vunpack.c.1.s8 %v2829_v49 }
  0x2e   :  { %401 = vrot.lane.b32.xlu2 %v316_v18, %s2623_s5  ;;  %153 = vst.msk [vmem:[#allocation2 + $0x48] sm:$0xff] %vm143_vm1, %v2624_v16  ;;  %2101 = vmatmul.msk.f32.vlgmr.msra.gmra.mxu0 %vm143_vm1, %v553_v36  ;;  %v338_v2 = vcvt.s32.f32 %v2321_v63  ;;  %v331_v3 = vcvt.s32.f32 %v2308_v0  ;;  %v2325_v18 = vunpack.c.1.s8 %v2367_v5  ;;  %v2309_v24 = vunpack.c.3.s8 %v2829_v49  ;;  %v2369_v36 = vld [vmem:[#allocation6 + $0x40] sm:$0xff]  }
  0x2f   :  { %154 = vst.msk [vmem:[#allocation2 + $0x50] sm:$0xff] %vm143_vm1, %v2624_v16  ;;  %v339_v8 = vcvt.s32.f32 %v2324_v7  ;;  %v337_v14 = vcvt.s32.f32 %v2320_v10  ;;  %v333_v15 = vcvt.s32.f32 %v2312_v13  ;;  %v2329_v28 = vunpack.c.3.s8 %v2367_v5 }
  0x30   :  { %155 = vst.msk [vmem:[#allocation2 + $0x58] sm:$0xff] %vm143_vm1, %v2624_v16  ;;  %v340_v21 = vcvt.s32.f32 %v2325_v18  ;;  %v332_v26 = vcvt.s32.f32 %v2309_v24  ;;  %v2328_v37 = vunpack.c.2.s8 %v2367_v5  ;;  %v2333_v38 = vunpack.c.1.s8 %v2369_v36 }
  0x31   :  { %156 = vst.msk [vmem:[#allocation2 + $0x60] sm:$0xff] %vm143_vm1, %v2624_v16  ;;  %v2336_v43 = vunpack.c.2.s8 %v2369_v36  ;;  %v2332_v44 = vunpack.c.0.s8 %v2369_v36  ;;  %v2337_v49 = vunpack.c.3.s8 %v2369_v36  ;;  %vm188_vm3 = vcmask 97280  }
  0x32   :  { %157 = vst.msk [vmem:[#allocation2 + $0x68] sm:$0xff] %vm143_vm1, %v2624_v16  ;;  %v344_v40 = vcvt.s32.f32 %v2333_v38  ;;  %vm1363_vm4 = vcmask 1043456   ;;  %vm1244_vm5 = vcmask 89096   ;;  %vm213_vm6 = vcmask 64512  }
  0x33   :  { %158 = vst.msk [vmem:[#allocation2 + $0x70] sm:$0xff] %vm143_vm1, %v2624_v16  ;;  %v345_v45 = vcvt.s32.f32 %v2336_v43  ;;  %vm1635_vm7 = vcmask 48136   ;;  %vm1846_vm8 = vcmask 23552   ;;  %vm1852_vm9 = vcmask 48152  }
  0x34   :  { %159 = vst.msk [vmem:[#allocation2 + $0x78] sm:$0xff] %vm143_vm1, %v2624_v16  ;;  %vm1858_vm10 = vcmask 72752   ;;  %vm1864_vm11 = vcmask 97352   ;;  %vm1870_vm12 = vcmask 121952   ;;  %vm1876_vm13 = vcmask 146552  }
  0x35   :  { %403 = vrot.lane.b32.xlu0 %v317_v22, %s2623_s5  ;;  %405 = vrot.lane.b32.xlu1 %v318_v23, %s2623_s5  ;;  %160 = vst.msk [vmem:[#allocation2 + $0x80] sm:$0xff] %vm143_vm1, %v2624_v16  ;;  %v330_v22 = vcvt.s32.f32 %v2305_v19  ;;  %vm1883_vm14 = vcmask 294032  }
  0x36   :  { %407 = vrot.lane.b32.xlu2 %v319_v25, %s2623_s5  ;;  %161 = vst.msk [vmem:[#allocation2 + $0x88] sm:$0xff] %vm143_vm1, %v2624_v16 }
  0x37   :  { %162 = vst.msk [vmem:[#allocation2 + $0x90] sm:$0xff] %vm143_vm1, %v2624_v16 }
  0x38   :  { %163 = vst.msk [vmem:[#allocation2 + $0x98] sm:$0xff] %vm143_vm1, %v2624_v16 }
  0x39   :  { %164 = vst.msk [vmem:[#allocation2 + $0xa0] sm:$0xff] %vm143_vm1, %v2624_v16 }
  0x3a   :  { %165 = vst.msk [vmem:[#allocation2 + $0xa8] sm:$0xff] %vm143_vm1, %v2624_v16 }
  0x3b   :  { %166 = vst.msk [vmem:[#allocation2 + $0xb0] sm:$0xff] %vm143_vm1, %v2624_v16 }
  0x3c   :  { %167 = vst.msk [vmem:[#allocation2 + $0xb8] sm:$0xff] %vm143_vm1, %v2624_v16 }
  0x3d   :  { %409 = vrot.lane.b32.xlu0 %v320_v29, %s2623_s5  ;;  %411 = vrot.lane.b32.xlu1 %v321_v30, %s2623_s5  ;;  %168 = vst.msk [vmem:[#allocation2 + $0xc0] sm:$0xff] %vm143_vm1, %v2624_v16  ;;  %v2313_v29 = vunpack.c.1.s8 %v2364_v11 }
  0x3e   :  { %413 = vrot.lane.b32.xlu2 %v322_v31, %s2623_s5  ;;  %169 = vst.msk [vmem:[#allocation2 + $0xc8] sm:$0xff] %vm143_vm1, %v2624_v16  ;;  %v342_v31 = vcvt.s32.f32 %v2329_v28 }
  0x3f   :  { %170 = vst.msk [vmem:[#allocation2 + $0xd0] sm:$0xff] %vm143_vm1, %v2624_v16  ;;  %v334_v32 = vcvt.s32.f32 %v2313_v29 }
  0x40   :  { %171 = vst.msk [vmem:[#allocation2 + $0xd8] sm:$0xff] %vm143_vm1, %v2624_v16 }
  0x41   :  { %172 = vst.msk [vmem:[#allocation2 + $0xe0] sm:$0xff] %vm143_vm1, %v2624_v16 }
  0x42   :  { %173 = vst.msk [vmem:[#allocation2 + $0xe8] sm:$0xff] %vm143_vm1, %v2624_v16 }
  0x43   :  { %174 = vst.msk [vmem:[#allocation2 + $0xf0] sm:$0xff] %vm143_vm1, %v2624_v16 }
  0x44   :  { %175 = vst.msk [vmem:[#allocation2 + $0xf8] sm:$0xff] %vm143_vm1, %v2624_v16 }
  0x45   :  { %415 = vrot.lane.b32.xlu0 %v323_v34, %s2623_s5  ;;  %417 = vrot.lane.b32.xlu1 %v324_v35, %s2623_s5  ;;  %176 = vst.msk [vmem:[#allocation2 + $0x100] sm:$0xff] %vm143_vm1, %v2624_v16 }
  0x46   :  { %177 = vst.msk [vmem:[#allocation2 + $0x108] sm:$0xff] %vm143_vm1, %v2624_v16  ;;  %419 = vrot.lane.b32.xlu2 %v325_v46, %s2623_s5  ;;  %v343_v46 = vcvt.s32.f32 %v2332_v44 }
  0x47   :  { %178 = vst.msk [vmem:[#allocation2 + $0x110] sm:$0xff] %vm143_vm1, %v2624_v16 }
  0x48   :  { %179 = vst.msk [vmem:[#allocation2 + $0x118] sm:$0xff] %vm143_vm1, %v2624_v16 }
  0x49   :  { %180 = vst.msk [vmem:[#allocation2 + $0x120] sm:$0xff] %vm143_vm1, %v2624_v16 }
  0x4a   :  { %181 = vst.msk [vmem:[#allocation2 + $0x128] sm:$0xff] %vm143_vm1, %v2624_v16 }
  0x4b   :  { %182 = vst.msk [vmem:[#allocation2 + $0x130] sm:$0xff] %vm143_vm1, %v2624_v16 }
  0x4c   :  { %183 = vst.msk [vmem:[#allocation2 + $0x138] sm:$0xff] %vm143_vm1, %v2624_v16 }
  0x4d   :  { %184 = vst.msk [vmem:[#allocation2 + $0x140] sm:$0xff] %vm143_vm1, %v2624_v16  ;;  %421 = vrot.lane.b32.xlu0 %v326_v39, %s2623_s5  ;;  %439 = vrot.lane.b32.xlu1 %v335_v42, %s2623_s5  ;;  %v341_v39 = vcvt.s32.f32 %v2328_v37 }
  0x4e   :  { %185 = vst.msk [vmem:[#allocation2 + $0x148] sm:$0xff] %vm143_vm1, %v2624_v16  ;;  %423 = vrot.lane.b32.xlu2 %v327_v57, %s2623_s5 }
  0x4f   :  { %186 = vst.msk [vmem:[#allocation2 + $0x150] sm:$0xff] %vm143_vm1, %v2624_v16 }
  0x50   :  { %187 = vst.msk [vmem:[#allocation2 + $0x158] sm:$0xff] %vm143_vm1, %v2624_v16 }
  0x51   :  { %230 = vst [vmem:[#allocation5] sm:$0xff] %v2624_v16 }
  0x52   :  { %190 = vst.msk [vmem:[#allocation3 + $0x8] sm:$0xff] %vm188_vm3, %v2624_v16 }
  0x53   :  { %189 = vst.msk [vmem:[#allocation3] sm:$0xff] %vm188_vm3, %v2624_v16 }
  0x54   :  { %191 = vst.msk [vmem:[#allocation3 + $0x10] sm:$0xff] %vm188_vm3, %v2624_v16 }
  0x55   :  { %441 = vrot.lane.b32.xlu0 %v336_v48, %s2623_s5  ;;  %425 = vrot.lane.b32.xlu1 %v328_v47, %s2623_s5  ;;  %192 = vst.msk [vmem:[#allocation3 + $0x18] sm:$0xff] %vm188_vm3, %v2624_v16 }
  0x56   :  { %443 = vrot.lane.b32.xlu2 %v337_v14, %s2623_s5  ;;  %193 = vst.msk [vmem:[#allocation3 + $0x20] sm:$0xff] %vm188_vm3, %v2624_v16 }
  0x57   :  { %194 = vst.msk [vmem:[#allocation3 + $0x28] sm:$0xff] %vm188_vm3, %v2624_v16 }
  0x58   :  { %195 = vst.msk [vmem:[#allocation3 + $0x30] sm:$0xff] %vm188_vm3, %v2624_v16 }
  0x59   :  { %196 = vst.msk [vmem:[#allocation3 + $0x38] sm:$0xff] %vm188_vm3, %v2624_v16 }
  0x5a   :  { %197 = vst.msk [vmem:[#allocation3 + $0x40] sm:$0xff] %vm188_vm3, %v2624_v16 }
  0x5b   :  { %198 = vst.msk [vmem:[#allocation3 + $0x48] sm:$0xff] %vm188_vm3, %v2624_v16 }
  0x5c   :  { %199 = vst.msk [vmem:[#allocation3 + $0x50] sm:$0xff] %vm188_vm3, %v2624_v16 }
  0x5d   :  { %427 = vrot.lane.b32.xlu0 %v329_v52, %s2623_s5  ;;  %445 = vrot.lane.b32.xlu1 %v338_v2, %s2623_s5  ;;  %v346_v52 = vcvt.s32.f32 %v2337_v49  ;;  %200 = vst.msk [vmem:[#allocation3 + $0x58] sm:$0xff] %vm188_vm3, %v2624_v16 }
  0x5e   :  { %429 = vrot.lane.b32.xlu2 %v330_v22, %s2623_s5  ;;  %201 = vst.msk [vmem:[#allocation3 + $0x60] sm:$0xff] %vm188_vm3, %v2624_v16 }
  0x5f   :  { %202 = vst.msk [vmem:[#allocation3 + $0x68] sm:$0xff] %vm188_vm3, %v2624_v16 }
  0x60   :  { %203 = vst.msk [vmem:[#allocation3 + $0x70] sm:$0xff] %vm188_vm3, %v2624_v16 }
  0x61   :  { %204 = vst.msk [vmem:[#allocation3 + $0x78] sm:$0xff] %vm188_vm3, %v2624_v16 }
  0x62   :  { %205 = vst.msk [vmem:[#allocation3 + $0x80] sm:$0xff] %vm188_vm3, %v2624_v16 }
  0x63   :  { %206 = vst.msk [vmem:[#allocation3 + $0x88] sm:$0xff] %vm188_vm3, %v2624_v16 }
  0x64   :  { %207 = vst.msk [vmem:[#allocation3 + $0x90] sm:$0xff] %vm188_vm3, %v2624_v16 }
  0x65   :  { %431 = vrot.lane.b32.xlu0 %v331_v3, %s2623_s5  ;;  %447 = vrot.lane.b32.xlu1 %v339_v8, %s2623_s5  ;;  %208 = vst.msk [vmem:[#allocation3 + $0x98] sm:$0xff] %vm188_vm3, %v2624_v16 }
  0x66   :  { %433 = vrot.lane.b32.xlu2 %v332_v26, %s2623_s5  ;;  %209 = vst.msk [vmem:[#allocation3 + $0xa0] sm:$0xff] %vm188_vm3, %v2624_v16 }
  0x67   :  { %210 = vst.msk [vmem:[#allocation3 + $0xa8] sm:$0xff] %vm188_vm3, %v2624_v16 }
  0x68   :  { %211 = vst.msk [vmem:[#allocation3 + $0xb0] sm:$0xff] %vm188_vm3, %v2624_v16 }
  0x69   :  { %212 = vst.msk [vmem:[#allocation3 + $0xb8] sm:$0xff] %vm188_vm3, %v2624_v16 }
  0x6d   :  { %435 = vrot.lane.b32.xlu1 %v333_v15, %s2623_s5  ;;  %449 = vrot.lane.b32.xlu0 %v340_v21, %s2623_s5 }
  0x6e   :  { %451 = vrot.lane.b32.xlu2 %v341_v39, %s2623_s5 }
  0x75   :  { %453 = vrot.lane.b32.xlu1 %v342_v31, %s2623_s5  ;;  %437 = vrot.lane.b32.xlu0 %v334_v32, %s2623_s5 }
  0x76   :  { %455 = vrot.lane.b32.xlu2 %v343_v46, %s2623_s5 }
  0x7d   :  { %457 = vrot.lane.b32.xlu0 %v344_v40, %s2623_s5  ;;  %459 = vrot.lane.b32.xlu1 %v345_v45, %s2623_s5 }
  0x7e   :  { %461 = vrot.lane.b32.xlu2 %v346_v52, %s2623_s5 }
  0x80   :  { %v400_v50 = vpop.permute.xlu2 %399 }
  0x81   :  { %517 = vst.msk [vmem:[#allocation2 + $0x28] sm:$0xff] %vm512_vm2, %v400_v50  ;;  %v2371_v50 = vld [vmem:[#allocation6 + $0x48] sm:$0xff]  }
  0x82   :  { %v2341_v51 = vunpack.c.1.s8 %v2371_v50  ;;  %v2340_v57 = vunpack.c.0.s8 %v2371_v50 }
  0x88   :  { %v402_v56 = vpop.permute.xlu2 %401  ;;  %v558_v17 = vld [vmem:[#allocation2 + $0x28] sm:$0xff] }
  0x89   :  { %518 = vst.msk [vmem:[#allocation2 + $0x30] sm:$0xff] %vm512_vm2, %v402_v56 }
  0x90   :  { %v408_v6 = vpop.permute.xlu2 %407  ;;  %v559_v23 = vld [vmem:[#allocation2 + $0x30] sm:$0xff] }
  0x91   :  { %521 = vst.msk [vmem:[#allocation2 + $0x48] sm:$0xff] %vm512_vm2, %v408_v6 }
  0x97   :  { %v392_v53 = vpop.permute.xlu0 %391  ;;  %v396_v54 = vpop.permute.xlu1 %395 }
  0x98   :  { %513 = vst.msk [vmem:[#allocation2 + $0x8] sm:$0xff] %vm512_vm2, %v392_v53  ;;  %v414_v25 = vpop.permute.xlu2 %413  ;;  %v562_v35 = vld [vmem:[#allocation2 + $0x48] sm:$0xff]  ;;  %v348_v53 = vcvt.s32.f32 %v2341_v51 }
  0x99   :  { %515 = vst.msk [vmem:[#allocation2 + $0x18] sm:$0xff] %vm512_vm2, %v396_v54 }
  0x9a   :  { %524 = vst.msk [vmem:[#allocation2 + $0x60] sm:$0xff] %vm512_vm2, %v414_v25  ;;  %465 = vrot.lane.b32.xlu1 %v348_v53, %s2623_s5 }
  0x9f   :  { %v394_v58 = vpop.permute.xlu0 %393  ;;  %v554_v59 = vld [vmem:[#allocation2 + $0x8] sm:$0xff]  ;;  %v398_v60 = vpop.permute.xlu1 %397 }
  0xa0   :  { %514 = vst.msk [vmem:[#allocation2 + $0x10] sm:$0xff] %vm512_vm2, %v394_v58  ;;  %2102 = vmatmul.msk.f32.gmra.mxu0 %vm143_vm1, %v554_v59  ;;  %v556_v4 = vld [vmem:[#allocation2 + $0x18] sm:$0xff]  ;;  %v420_v42 = vpop.permute.xlu2 %419  ;;  %v347_v58 = vcvt.s32.f32 %v2340_v57  ;;  %v2344_v59 = vunpack.c.2.s8 %v2371_v50 }
  0xa1   :  { %516 = vst.msk [vmem:[#allocation2 + $0x20] sm:$0xff] %vm512_vm2, %v398_v60  ;;  %v565_v54 = vld [vmem:[#allocation2 + $0x60] sm:$0xff] }
  0xa2   :  { %527 = vst.msk [vmem:[#allocation2 + $0x78] sm:$0xff] %vm512_vm2, %v420_v42  ;;  %463 = vrot.lane.b32.xlu0 %v347_v58, %s2623_s5  ;;  %v349_v60 = vcvt.s32.f32 %v2344_v59 }
  0xa4   :  { %467 = vrot.lane.b32.xlu2 %v349_v60, %s2623_s5 }
  0xa7   :  { %v555_v61 = vld [vmem:[#allocation2 + $0x10] sm:$0xff]  ;;  %v404_v62 = vpop.permute.xlu0 %403  ;;  %v406_v1 = vpop.permute.xlu1 %405 }
  0xa8   :  { %2103 = vmatmul.msk.f32.gmra.mxu0 %vm143_vm1, %v555_v61  ;;  %519 = vst.msk [vmem:[#allocation2 + $0x38] sm:$0xff] %vm512_vm2, %v404_v62  ;;  %v557_v9 = vld [vmem:[#allocation2 + $0x20] sm:$0xff]  ;;  %v424_v55 = vpop.permute.xlu2 %423 }
  0xa9   :  { %520 = vst.msk [vmem:[#allocation2 + $0x40] sm:$0xff] %vm512_vm2, %v406_v1  ;;  %v2345_v1 = vunpack.c.3.s8 %v2371_v50  ;;  %v568_v6 = vld [vmem:[#allocation2 + $0x78] sm:$0xff] }
  0xaa   :  { %529 = vst.msk [vmem:[#allocation2 + $0x88] sm:$0xff] %vm512_vm2, %v424_v55 }
  0xab   :  { %v350_v2 = vcvt.s32.f32 %v2345_v1  ;;  %v2894_v7 = vpop.f32.mrf.mxu0 }
  0xad   :  { %469 = vrot.lane.b32.xlu0 %v350_v2, %s2623_s5 }
  0xaf   :  { %v410_v12 = vpop.permute.xlu0 %409  ;;  %v412_v20 = vpop.permute.xlu1 %411  ;;  %v560_v27 = vld [vmem:[#allocation2 + $0x38] sm:$0xff] }
  0xb0   :  { %2104 = vmatmul.msk.f32.gmra.mxu0 %vm143_vm1, %v556_v4  ;;  %522 = vst.msk [vmem:[#allocation2 + $0x50] sm:$0xff] %vm512_vm2, %v410_v12  ;;  %v561_v33 = vld [vmem:[#allocation2 + $0x40] sm:$0xff] }
  0xb1   :  { %523 = vst.msk [vmem:[#allocation2 + $0x58] sm:$0xff] %vm512_vm2, %v412_v20  ;;  %v570_v11 = vld [vmem:[#allocation2 + $0x88] sm:$0xff] }
  0xb7   :  { %v416_v30 = vpop.permute.xlu0 %415  ;;  %v418_v34 = vpop.permute.xlu1 %417  ;;  %v563_v41 = vld [vmem:[#allocation2 + $0x50] sm:$0xff] }
  0xb8   :  { %2105 = vmatmul.msk.f32.gmra.mxu0 %vm143_vm1, %v557_v9  ;;  %525 = vst.msk [vmem:[#allocation2 + $0x68] sm:$0xff] %vm512_vm2, %v416_v30  ;;  %v564_v47 = vld [vmem:[#allocation2 + $0x58] sm:$0xff]  ;;  %v444_v9 = vpop.permute.xlu2 %443 }
  0xb9   :  { %526 = vst.msk [vmem:[#allocation2 + $0x70] sm:$0xff] %vm512_vm2, %v418_v34 }
  0xba   :  { %539 = vst.msk [vmem:[#allocation2 + $0xe8] sm:$0xff] %vm512_vm2, %v444_v9 }
  0xbf   :  { %v422_v48 = vpop.permute.xlu0 %421  ;;  %v440_v56 = vpop.permute.xlu1 %439  ;;  %v566_v61 = vld [vmem:[#allocation2 + $0x68] sm:$0xff] }
  0xc0   :  { %2106 = vmatmul.msk.f32.gmra.mxu0 %vm143_vm1, %v558_v17  ;;  %528 = vst.msk [vmem:[#allocation2 + $0x80] sm:$0xff] %vm512_vm2, %v422_v48  ;;  %v567_v3 = vld [vmem:[#allocation2 + $0x70] sm:$0xff]  ;;  %v430_v12 = vpop.permute.xlu2 %429 }
  0xc1   :  { %537 = vst.msk [vmem:[#allocation2 + $0xd8] sm:$0xff] %vm512_vm2, %v440_v56  ;;  %v582_v14 = vld [vmem:[#allocation2 + $0xe8] sm:$0xff] }
  0xc2   :  { %532 = vst.msk [vmem:[#allocation2 + $0xa0] sm:$0xff] %vm512_vm2, %v430_v12 }
  0xc7   :  { %v442_v62 = vpop.permute.xlu0 %441  ;;  %v426_v63 = vpop.permute.xlu1 %425  ;;  %v569_v8 = vld [vmem:[#allocation2 + $0x80] sm:$0xff] }
  0xc8   :  { %2107 = vmatmul.msk.f32.gmra.mxu0 %vm143_vm1, %v559_v23  ;;  %538 = vst.msk [vmem:[#allocation2 + $0xe0] sm:$0xff] %vm512_vm2, %v442_v62  ;;  %v580_v0 = vld [vmem:[#allocation2 + $0xd8] sm:$0xff]  ;;  %v434_v19 = vpop.permute.xlu2 %433 }
  0xc9   :  { %530 = vst.msk [vmem:[#allocation2 + $0x90] sm:$0xff] %vm512_vm2, %v426_v63  ;;  %2128 = vmatmul.msk.f32.vlgmr.msra.gmra.mxu3 %vm143_vm1, %v580_v0  ;;  %v573_v28 = vld [vmem:[#allocation2 + $0xa0] sm:$0xff] }
  0xca   :  { %534 = vst.msk [vmem:[#allocation2 + $0xc0] sm:$0xff] %vm512_vm2, %v434_v19 }
  0xcf   :  { %v428_v4 = vpop.permute.xlu0 %427  ;;  %v581_v5 = vld [vmem:[#allocation2 + $0xe0] sm:$0xff]  ;;  %v446_v13 = vpop.permute.xlu1 %445 }
  0xd0   :  { %2108 = vmatmul.msk.f32.gmra.mxu0 %vm143_vm1, %v560_v27  ;;  %531 = vst.msk [vmem:[#allocation2 + $0x98] sm:$0xff] %vm512_vm2, %v428_v4  ;;  %v571_v18 = vld [vmem:[#allocation2 + $0x90] sm:$0xff] }
  0xd1   :  { %2129 = vmatmul.msk.f32.gmra.mxu3 %vm143_vm1, %v581_v5  ;;  %540 = vst.msk [vmem:[#allocation2 + $0xf0] sm:$0xff] %vm512_vm2, %v446_v13  ;;  %v577_v25 = vld [vmem:[#allocation2 + $0xc0] sm:$0xff] }
  0xd7   :  { %v432_v15 = vpop.permute.xlu0 %431  ;;  %v448_v20 = vpop.permute.xlu1 %447  ;;  %v572_v23 = vld [vmem:[#allocation2 + $0x98] sm:$0xff] }
  0xd8   :  { %2109 = vmatmul.msk.f32.gmra.mxu0 %vm143_vm1, %v561_v33  ;;  %533 = vst.msk [vmem:[#allocation2 + $0xb8] sm:$0xff] %vm512_vm2, %v432_v15  ;;  %v583_v24 = vld [vmem:[#allocation2 + $0xf0] sm:$0xff]  ;;  %v452_v33 = vpop.permute.xlu2 %451 }
  0xd9   :  { %2130 = vmatmul.msk.f32.gmra.mxu3 %vm143_vm1, %v582_v14  ;;  %541 = vst.msk [vmem:[#allocation2 + $0xf8] sm:$0xff] %vm512_vm2, %v448_v20 }
  0xda   :  { %543 = vst.msk [vmem:[#allocation2 + $0x108] sm:$0xff] %vm512_vm2, %v452_v33  ;;  %v575_v33 = vld [vmem:[#allocation2 + $0xb0] sm:$0xff] }
  0xdf   :  { %v576_v21 = vld [vmem:[#allocation2 + $0xb8] sm:$0xff]  ;;  %v436_v26 = vpop.permute.xlu1 %435  ;;  %v450_v29 = vpop.permute.xlu0 %449 }
  0xe0   :  { %2110 = vmatmul.msk.f32.gmra.mxu0 %vm143_vm1, %v562_v35  ;;  %2124 = vmatmul.msk.f32.vlgmr.msra.gmra.mxu2 %vm143_vm1, %v576_v21  ;;  %535 = vst.msk [vmem:[#allocation2 + $0xc8] sm:$0xff] %vm512_vm2, %v436_v26  ;;  %v584_v30 = vld [vmem:[#allocation2 + $0xf8] sm:$0xff]  ;;  %v456_v39 = vpop.permute.xlu2 %455  ;;  %v574_v26 = vld [vmem:[#allocation2 + $0xa8] sm:$0xff] }
  0xe1   :  { %2131 = vmatmul.msk.f32.gmra.mxu3 %vm143_vm1, %v583_v24  ;;  %542 = vst.msk [vmem:[#allocation2 + $0x100] sm:$0xff] %vm512_vm2, %v450_v29  ;;  %v586_v38 = vld [vmem:[#allocation2 + $0x108] sm:$0xff] }
  0xe2   :  { %545 = vst.msk [vmem:[#allocation2 + $0x118] sm:$0xff] %vm512_vm2, %v456_v39 }
  0xe7   :  { %v578_v31 = vld [vmem:[#allocation2 + $0xc8] sm:$0xff]  ;;  %v454_v36 = vpop.permute.xlu1 %453  ;;  %v438_v37 = vpop.permute.xlu0 %437 }
  0xe8   :  { %2111 = vmatmul.msk.f32.gmra.mxu0 %vm143_vm1, %v563_v41  ;;  %2125 = vmatmul.msk.f32.gmra.mxu2 %vm143_vm1, %v577_v25  ;;  %v585_v34 = vld [vmem:[#allocation2 + $0x100] sm:$0xff]  ;;  %544 = vst.msk [vmem:[#allocation2 + $0x110] sm:$0xff] %vm512_vm2, %v454_v36  ;;  %v462_v43 = vpop.permute.xlu2 %461 }
  0xe9   :  { %2132 = vmatmul.msk.f32.gmra.mxu3 %vm143_vm1, %v584_v30  ;;  %536 = vst.msk [vmem:[#allocation2 + $0xd0] sm:$0xff] %vm512_vm2, %v438_v37  ;;  %v588_v46 = vld [vmem:[#allocation2 + $0x118] sm:$0xff] }
  0xea   :  { %548 = vst.msk [vmem:[#allocation2 + $0x130] sm:$0xff] %vm512_vm2, %v462_v43 }
  0xef   :  { %v587_v41 = vld [vmem:[#allocation2 + $0x110] sm:$0xff]  ;;  %v458_v45 = vpop.permute.xlu0 %457  ;;  %v460_v49 = vpop.permute.xlu1 %459 }
  0xf0   :  { %2112 = vmatmul.msk.f32.gmra.mxu0 %vm143_vm1, %v564_v47  ;;  %2126 = vmatmul.msk.f32.gmra.mxu2 %vm143_vm1, %v578_v31  ;;  %v579_v42 = vld [vmem:[#allocation2 + $0xd0] sm:$0xff]  ;;  %546 = vst.msk [vmem:[#allocation2 + $0x120] sm:$0xff] %vm512_vm2, %v458_v45 }
  0xf1   :  { %2133 = vmatmul.msk.f32.gmra.mxu3 %vm143_vm1, %v585_v34  ;;  %547 = vst.msk [vmem:[#allocation2 + $0x128] sm:$0xff] %vm512_vm2, %v460_v49  ;;  %v591_v56 = vld [vmem:[#allocation2 + $0x130] sm:$0xff] }
  0xf7   :  { %v589_v50 = vld [vmem:[#allocation2 + $0x120] sm:$0xff] }
  0xf8   :  { %2113 = vmatmul.msk.f32.gmra.mxu0 %vm143_vm1, %v565_v54  ;;  %2127 = vmatmul.msk.f32.gmra.mxu2 %vm143_vm1, %v579_v42  ;;  %v590_v52 = vld [vmem:[#allocation2 + $0x128] sm:$0xff] }
  0xf9   :  { %2134 = vmatmul.msk.f32.gmra.mxu3 %vm143_vm1, %v586_v38 }
  0xfe   :  { %v468_v47 = vpop.permute.xlu2 %467 }
  0xff   :  { %551 = vst.msk [vmem:[#allocation2 + $0x148] sm:$0xff] %vm512_vm2, %v468_v47 }
 0x100   :  { %2114 = vmatmul.msk.f32.gmra.mxu0 %vm143_vm1, %v566_v61 }
 0x101   :  { %2135 = vmatmul.msk.f32.gmra.mxu3 %vm143_vm1, %v587_v41 }
 0x106   :  { %v594_v63 = vld [vmem:[#allocation2 + $0x148] sm:$0xff] }
 0x108   :  { %2115 = vmatmul.msk.f32.gmra.mxu0 %vm143_vm1, %v567_v3 }
 0x109   :  { %2136 = vmatmul.msk.f32.gmra.mxu3 %vm143_vm1, %v588_v46 }
 0x10c   :  { %v466_v53 = vpop.permute.xlu1 %465 }
 0x10d   :  { %550 = vst.msk [vmem:[#allocation2 + $0x140] sm:$0xff] %vm512_vm2, %v466_v53 }
 0x110   :  { %2116 = vmatmul.msk.f32.gmra.mxu0 %vm143_vm1, %v568_v6 }
 0x111   :  { %2137 = vmatmul.msk.f32.gmra.mxu3 %vm143_vm1, %v589_v50 }
 0x114   :  { %v464_v55 = vpop.permute.xlu0 %463  ;;  %v593_v61 = vld [vmem:[#allocation2 + $0x140] sm:$0xff] }
 0x115   :  { %549 = vst.msk [vmem:[#allocation2 + $0x138] sm:$0xff] %vm512_vm2, %v464_v55 }
 0x118   :  { %2117 = vmatmul.msk.f32.gmra.mxu0 %vm143_vm1, %v569_v8 }
 0x119   :  { %2138 = vmatmul.msk.f32.gmra.mxu3 %vm143_vm1, %v590_v52 }
 0x11c   :  { %v592_v58 = vld [vmem:[#allocation2 + $0x138] sm:$0xff] }
 0x11d   :  { %v756_v10 = vpop.f32.mrf.mxu0 }
 0x11e   :  { %903 = vrot.lane.b32.xlu1 %v756_v10, %s2625_s8 }
 0x11f   :  { %v470_v59 = vpop.permute.xlu0 %469 }
 0x120   :  { %2118 = vmatmul.msk.f32.gmra.mxu0 %vm143_vm1, %v570_v11  ;;  %552 = vst.msk [vmem:[#allocation2 + $0x150] sm:$0xff] %vm512_vm2, %v470_v59 }
 0x121   :  { %2139 = vmatmul.msk.f32.gmra.mxu3 %vm143_vm1, %v591_v56 }
 0x125   :  { %v2904_v17 = vpop.f32.mrf.mxu0 }
 0x126   :  { %1003 = vrot.lane.b32.xlu2 %v2904_v17, %s2626_s1 }
 0x128   :  { %2119 = vmatmul.msk.f32.gmra.mxu0 %vm143_vm1, %v571_v18 }
 0x129   :  { %2140 = vmatmul.msk.f32.gmra.mxu3 %vm143_vm1, %v592_v58 }
 0x12d   :  { %v762_v22 = vpop.f32.mrf.mxu0 }
 0x12e   :  { %905 = vrot.lane.b32.xlu0 %v762_v22, %s2625_s8 }
 0x130   :  { %2120 = vmatmul.msk.f32.gmra.mxu0 %vm143_vm1, %v572_v23  ;;  %v595_v23 = vld [vmem:[#allocation2 + $0x150] sm:$0xff] }
 0x131   :  { %2141 = vmatmul.msk.f32.gmra.mxu3 %vm143_vm1, %v593_v61 }
 0x135   :  { %v2917_v27 = vpop.f32.mrf.mxu0 }
 0x136   :  { %1005 = vrot.lane.b32.xlu1 %v2917_v27, %s2626_s1 }
 0x138   :  { %2121 = vmatmul.msk.f32.gmra.mxu0 %vm143_vm1, %v573_v28 }
 0x139   :  { %2142 = vmatmul.msk.f32.gmra.mxu3 %vm143_vm1, %v594_v63 }
 0x13d   :  { %v768_v32 = vpop.f32.mrf.mxu0 }
 0x13e   :  { %907 = vrot.lane.b32.xlu2 %v768_v32, %s2625_s8 }
 0x140   :  { %2122 = vmatmul.msk.f32.gmra.mxu0 %vm143_vm1, %v574_v26 }
 0x141   :  { %2143 = vmatmul.msk.f32.gmra.mxu3 %vm143_vm1, %v595_v23 }
 0x145   :  { %v2928_v35 = vpop.f32.mrf.mxu0 }
 0x146   :  { %1007 = vrot.lane.b32.xlu0 %v2928_v35, %s2626_s1 }
 0x148   :  { %2123 = vmatmul.msk.f32.gmra.mxu0 %vm143_vm1, %v575_v33 }
 0x14c   :  { %v833_v12 = vpop.f32.mrf.mxu3 }
 0x14d   :  { %v774_v40 = vpop.f32.mrf.mxu0 }
 0x14e   :  { %909 = vrot.lane.b32.xlu1 %v774_v40, %s2625_s8 }
 0x154   :  { %v2985_v19 = vpop.f32.mrf.mxu3 }
 0x155   :  { %v2940_v44 = vpop.f32.mrf.mxu0 }
 0x156   :  { %1009 = vrot.lane.b32.xlu2 %v2940_v44, %s2626_s1 }
 0x15c   :  { %v839_v28 = vpop.f32.mrf.mxu3 }
 0x15d   :  { %v780_v48 = vpop.f32.mrf.mxu0 }
 0x15e   :  { %911 = vrot.lane.b32.xlu0 %v780_v48, %s2625_s8 }
 0x163   :  { %v821_v46 = vpop.f32.mrf.mxu2 }
 0x164   :  { %v2993_v34 = vpop.f32.mrf.mxu3 }
 0x165   :  { %v2950_v51 = vpop.f32.mrf.mxu0 }
 0x166   :  { %1011 = vrot.lane.b32.xlu1 %v2950_v51, %s2626_s1 }
 0x16b   :  { %v3003_v52 = vpop.f32.mrf.mxu2 }
 0x16c   :  { %v2998_v45 = vpop.f32.mrf.mxu3 }
 0x16d   :  { %v786_v54 = vpop.f32.mrf.mxu0 }
 0x16e   :  { %913 = vrot.lane.b32.xlu2 %v786_v54, %s2625_s8 }
 0x173   :  { %v827_v58 = vpop.f32.mrf.mxu2 }
 0x174   :  { %v3001_v50 = vpop.f32.mrf.mxu3 }
 0x175   :  { %v2959_v57 = vpop.f32.mrf.mxu0 }
 0x176   :  { %1013 = vrot.lane.b32.xlu0 %v2959_v57, %s2626_s1 }
 0x17c   :  { %v3007_v55 = vpop.f32.mrf.mxu3 }
 0x17d   :  { %v792_v60 = vpop.f32.mrf.mxu0 }
 0x17e   :  { %915 = vrot.lane.b32.xlu1 %v792_v60, %s2625_s8 }
 0x180   :  { %v1004_v3 = vpop.permute.xlu2 %1003 }
 0x185   :  { %v2967_v62 = vpop.f32.mrf.mxu0 }
 0x186   :  { %1015 = vrot.lane.b32.xlu2 %v2967_v62, %s2626_s1 }
 0x18d   :  { %v798_v0 = vpop.f32.mrf.mxu0 }
 0x18e   :  { %917 = vrot.lane.b32.xlu1 %v798_v0, %s2625_s8  ;;  %v3010_v0 = vpop.f32.mrf.mxu3 }
 0x190   :  { %v904_v1 = vpop.permute.xlu1 %903 }
 0x191   :  { %v963_v2 = vadd.f32 %v904_v1, %v2894_v7 }
 0x193   :  { %v1063_v4 = vadd.f32 %v1004_v3, %v963_v2 }
 0x195   :  { %v1083_v5 = vadd.f32 0.08869219, %v1063_v4  ;;  %v2974_v6 = vpop.f32.mrf.mxu0 }
 0x196   :  { %1017 = vrot.lane.b32.xlu2 %v2974_v6, %s2626_s1 }
 0x197   :  { %v1103_v8 = vmax.f32 %v1083_v5, 0.0  ;;  %v1290_v5 = vld [vmem:[#allocation12 + $0x8] sm:$0xf] }
 0x198   :  { %2145 = vmatpush.msk.msra.mxu1 %vm1363_vm4, %v1290_v5  ;;  %2352 = vmatpush.msk.msrb.mxu2 %vm1363_vm4, %v1290_v5 }
 0x199   :  { %v1123_v9 = vpack.c.bf16 %v1103_v8, %v1103_v8 }
 0x19b   :  { %v1143_v10 = vunpack.c.l.bf16 %v1123_v9  ;;  %v1289_v9 = vld [vmem:[#allocation12] sm:$0xff] }
 0x19c   :  { %1382 = vmatpush.msra.mxu1 %v1289_v9  ;;  %2353 = vmatpush.msrb.mxu2 %v1289_v9 }
 0x19d   :  { %1183 = vrot.lane.b32.xlu0 %v1143_v10, %s2623_s5  ;;  %v804_v11 = vpop.f32.mrf.mxu0 }
 0x19e   :  { %919 = vrot.lane.b32.xlu1 %v804_v11, %s2625_s8 }
 0x1a0   :  { %v906_v13 = vpop.permute.xlu0 %905 }
 0x1a1   :  { %v964_v7 = vadd.f32 %v906_v13, %v2904_v17  ;;  %v908_v17 = vpop.permute.xlu2 %907  ;;  %v1265_v13 = vld [vmem:[#allocation3] sm:$0xff] }
 0x1a2   :  { %v965_v30 = vadd.f32 %v908_v17, %v2917_v27  ;;  %2146 = vmatmul.msk.f32.vlgmr.msra.gmra.mxu1 %vm188_vm3, %v1265_v13 }
 0x1a5   :  { %v2980_v14 = vpop.f32.mrf.mxu0 }
 0x1a6   :  { %1019 = vrot.lane.b32.xlu2 %v2980_v14, %s2626_s1 }
 0x1a8   :  { %v1006_v15 = vpop.permute.xlu1 %1005 }
 0x1a9   :  { %v1064_v18 = vadd.f32 %v1006_v15, %v964_v7 }
 0x1ab   :  { %v1084_v20 = vadd.f32 0.08869219, %v1064_v18 }
 0x1ad   :  { %v1104_v21 = vmax.f32 %v1084_v20, 0.0  ;;  %v810_v22 = vpop.f32.mrf.mxu0 }
 0x1ae   :  { %921 = vrot.lane.b32.xlu1 %v810_v22, %s2625_s8 }
 0x1af   :  { %v1124_v24 = vpack.c.bf16 %v1104_v21, %v1104_v21 }
 0x1b0   :  { %v1010_v42 = vpop.permute.xlu2 %1009 }
 0x1b1   :  { %v1144_v25 = vunpack.c.l.bf16 %v1124_v24 }
 0x1b3   :  { %1185 = vrot.lane.b32.xlu0 %v1144_v25, %s2623_s5 }
 0x1b5   :  { %v813_v29 = vpop.f32.mrf.mxu0 }
 0x1b6   :  { %1021 = vrot.lane.b32.xlu2 %v813_v29, %s2626_s1 }
 0x1b8   :  { %v1008_v31 = vpop.permute.xlu0 %1007 }
 0x1b9   :  { %v1065_v32 = vadd.f32 %v1008_v31, %v965_v30 }
 0x1bb   :  { %v1085_v36 = vadd.f32 0.08869219, %v1065_v32 }
 0x1bd   :  { %v1105_v37 = vmax.f32 %v1085_v36, 0.0 }
 0x1bf   :  { %v1125_v38 = vpack.c.bf16 %v1105_v37, %v1105_v37 }
 0x1c0   :  { %v910_v39 = vpop.permute.xlu1 %909 }
 0x1c1   :  { %v1145_v40 = vunpack.c.l.bf16 %v1125_v38  ;;  %v966_v41 = vadd.f32 %v910_v39, %v2928_v35 }
 0x1c3   :  { %v1066_v43 = vadd.f32 %v1010_v42, %v966_v41  ;;  %1187 = vrot.lane.b32.xlu0 %v1145_v40, %s2623_s5 }
 0x1c5   :  { %v1086_v27 = vadd.f32 0.08869219, %v1066_v43 }
 0x1c7   :  { %v1106_v47 = vmax.f32 %v1086_v27, 0.0 }
 0x1c8   :  { %v914_v1 = vpop.permute.xlu2 %913 }
 0x1c9   :  { %v1126_v48 = vpack.c.bf16 %v1106_v47, %v1106_v47 }
 0x1cb   :  { %v1146_v49 = vunpack.c.l.bf16 %v1126_v48 }
 0x1cd   :  { %1189 = vrot.lane.b32.xlu0 %v1146_v49, %s2623_s5 }
 0x1d0   :  { %v912_v53 = vpop.permute.xlu0 %911 }
 0x1d1   :  { %v967_v35 = vadd.f32 %v912_v53, %v2940_v44  ;;  %v968_v44 = vadd.f32 %v914_v1, %v2950_v51  ;;  %v3025_v51 = vpop.f32.mrf.mxu3 }
 0x1d5   :  { %923 = vrot.lane.b32.xlu0 %v821_v46, %s2625_s8 }
 0x1d8   :  { %v1012_v54 = vpop.permute.xlu1 %1011 }
 0x1d9   :  { %v1067_v56 = vadd.f32 %v1012_v54, %v967_v35  ;;  %v3057_v21 = vpop.f32.mrf.mxu3 }
 0x1db   :  { %v1087_v59 = vadd.f32 0.08869219, %v1067_v56 }
 0x1dd   :  { %v1107_v60 = vmax.f32 %v1087_v59, 0.0  ;;  %925 = vrot.lane.b32.xlu0 %v827_v58, %s2625_s8 }
 0x1df   :  { %v1127_v61 = vpack.c.bf16 %v1107_v60, %v1107_v60 }
 0x1e0   :  { %v1016_v18 = vpop.permute.xlu2 %1015 }
 0x1e1   :  { %v1147_v63 = vunpack.c.l.bf16 %v1127_v61  ;;  %v863_v26 = vpop.f32.mrf.mxu3  ;;  %v816_v61 = vpop.f32.mrf.mxu0 }
 0x1e3   :  { %1191 = vrot.lane.b32.xlu1 %v1147_v63, %s2623_s5 }
 0x1e5   :  { %927 = vrot.lane.b32.xlu0 %v833_v12, %s2625_s8  ;;  %v3036_v12 = vpop.f32.mrf.mxu2 }
 0x1e8   :  { %v1014_v2 = vpop.permute.xlu0 %1013 }
 0x1e9   :  { %v1068_v3 = vadd.f32 %v1014_v2, %v968_v44  ;;  %v3087_v33 = vpop.f32.mrf.mxu3 }
 0x1eb   :  { %v1088_v4 = vadd.f32 0.08869219, %v1068_v3  ;;  %1023 = vrot.lane.b32.xlu1 %v3003_v52, %s2626_s1 }
 0x1ed   :  { %v1108_v8 = vmax.f32 %v1088_v4, 0.0  ;;  %929 = vrot.lane.b32.xlu0 %v839_v28, %s2625_s8 }
 0x1ef   :  { %v1128_v10 = vpack.c.bf16 %v1108_v8, %v1108_v8 }
 0x1f0   :  { %v916_v11 = vpop.permute.xlu1 %915  ;;  %v1018_v17 = vpop.permute.xlu2 %1017 }
 0x1f1   :  { %v1148_v7 = vunpack.c.l.bf16 %v1128_v10  ;;  %v969_v15 = vadd.f32 %v916_v11, %v2959_v57  ;;  %v869_v40 = vpop.f32.mrf.mxu3 }
 0x1f3   :  { %v1069_v20 = vadd.f32 %v1016_v18, %v969_v15  ;;  %1025 = vrot.lane.b32.xlu1 %v3036_v12, %s2626_s1  ;;  %1193 = vrot.lane.b32.xlu2 %v1148_v7, %s2623_s5 }
 0x1f5   :  { %v1089_v57 = vadd.f32 0.08869219, %v1069_v20  ;;  %931 = vrot.lane.b32.xlu0 %v2998_v45, %s2625_s8 }
 0x1f7   :  { %v1109_v22 = vmax.f32 %v1089_v57, 0.0 }
 0x1f9   :  { %v1129_v23 = vpack.c.bf16 %v1109_v22, %v1109_v22  ;;  %v3099_v46 = vpop.f32.mrf.mxu3 }
 0x1fb   :  { %1027 = vrot.lane.b32.xlu1 %v2985_v19, %s2626_s1  ;;  %v1149_v24 = vunpack.c.l.bf16 %v1129_v23 }
 0x1fd   :  { %1195 = vrot.lane.b32.xlu2 %v1149_v24, %s2623_s5  ;;  %1033 = vrot.lane.b32.xlu0 %v3010_v0, %s2626_s1 }
 0x200   :  { %v918_v25 = vpop.permute.xlu1 %917  ;;  %v1020_v38 = vpop.permute.xlu2 %1019 }
 0x201   :  { %v970_v28 = vadd.f32 %v918_v25, %v2967_v62  ;;  %v875_v56 = vpop.f32.mrf.mxu3 }
 0x203   :  { %v1070_v29 = vadd.f32 %v1018_v17, %v970_v28  ;;  %1029 = vrot.lane.b32.xlu1 %v2993_v34, %s2626_s1 }
 0x205   :  { %v1090_v30 = vadd.f32 0.08869219, %v1070_v29 }
 0x207   :  { %v1110_v31 = vmax.f32 %v1090_v30, 0.0 }
 0x209   :  { %v1130_v32 = vpack.c.bf16 %v1110_v31, %v1110_v31  ;;  %v878_v3 = vpop.f32.mrf.mxu3 }
 0x20b   :  { %1031 = vrot.lane.b32.xlu1 %v3001_v50, %s2626_s1  ;;  %v1150_v36 = vunpack.c.l.bf16 %v1130_v32 }
 0x20d   :  { %1197 = vrot.lane.b32.xlu2 %v1150_v36, %s2623_s5 }
 0x20f   :  { %v1184_v16 = vpop.permute.xlu0 %1183 }
 0x210   :  { %1245 = vst.msk [vmem:[#allocation3 + $0x8] sm:$0xff] %vm1244_vm5, %v1184_v16  ;;  %v920_v62 = vpop.permute.xlu1 %919  ;;  %v1022_v47 = vpop.permute.xlu2 %1021 }
 0x211   :  { %v971_v37 = vadd.f32 %v920_v62, %v2974_v6 }
 0x213   :  { %v1071_v39 = vadd.f32 %v1020_v38, %v971_v37  ;;  %935 = vrot.lane.b32.xlu1 %v3025_v51, %s2625_s8  ;;  %v818_v51 = vpop.f32.mrf.mxu0 }
 0x215   :  { %v1091_v41 = vadd.f32 0.08869219, %v1071_v39 }
 0x217   :  { %v1111_v42 = vmax.f32 %v1091_v41, 0.0  ;;  %v1266_v43 = vld [vmem:[#allocation3 + $0x8] sm:$0xff] }
 0x218   :  { %2147 = vmatmul.msk.f32.gmra.mxu1 %vm188_vm3, %v1266_v43 }
 0x219   :  { %v1131_v45 = vpack.c.bf16 %v1111_v42, %v1111_v42 }
 0x21b   :  { %937 = vrot.lane.b32.xlu1 %v863_v26, %s2625_s8  ;;  %v1151_v27 = vunpack.c.l.bf16 %v1131_v45 }
 0x21d   :  { %1199 = vrot.lane.b32.xlu2 %v1151_v27, %s2623_s5 }
 0x220   :  { %v922_v6 = vpop.permute.xlu1 %921 }
 0x221   :  { %v972_v48 = vadd.f32 %v922_v6, %v2980_v14 }
 0x223   :  { %v1072_v49 = vadd.f32 %v1022_v47, %v972_v48  ;;  %939 = vrot.lane.b32.xlu1 %v869_v40, %s2625_s8 }
 0x225   :  { %v1092_v53 = vadd.f32 0.08869219, %v1072_v49  ;;  %v1186_v35 = vpop.permute.xlu0 %1185 }
 0x226   :  { %1246 = vst.msk [vmem:[#allocation3 + $0x10] sm:$0xff] %vm1244_vm5, %v1186_v35 }
 0x227   :  { %v1112_v54 = vmax.f32 %v1092_v53, 0.0 }
 0x229   :  { %v1132_v58 = vpack.c.bf16 %v1112_v54, %v1112_v54 }
 0x22b   :  { %v1152_v59 = vunpack.c.l.bf16 %v1132_v58  ;;  %941 = vrot.lane.b32.xlu1 %v875_v56, %s2625_s8 }
 0x22d   :  { %1201 = vrot.lane.b32.xlu2 %v1152_v59, %s2623_s5  ;;  %v1267_v60 = vld [vmem:[#allocation3 + $0x10] sm:$0xff] }
 0x22e   :  { %2148 = vmatmul.msk.f32.gmra.mxu1 %vm188_vm3, %v1267_v60 }
 0x235   :  { %v1188_v14 = vpop.permute.xlu0 %1187  ;;  %933 = vrot.lane.b32.xlu2 %v3007_v55, %s2625_s8 }
 0x236   :  { %1247 = vst.msk [vmem:[#allocation3 + $0x18] sm:$0xff] %vm1244_vm5, %v1188_v14 }
 0x23d   :  { %1035 = vrot.lane.b32.xlu2 %v3057_v21, %s2626_s1  ;;  %v1268_v63 = vld [vmem:[#allocation3 + $0x18] sm:$0xff] }
 0x23e   :  { %2149 = vmatmul.msk.f32.gmra.mxu1 %vm188_vm3, %v1268_v63 }
 0x23f   :  { %v1190_v1 = vpop.permute.xlu0 %1189 }
 0x240   :  { %1248 = vst.msk [vmem:[#allocation3 + $0x20] sm:$0xff] %vm1244_vm5, %v1190_v1 }
 0x245   :  { %1037 = vrot.lane.b32.xlu2 %v3087_v33, %s2626_s1 }
 0x247   :  { %v1269_v44 = vld [vmem:[#allocation3 + $0x20] sm:$0xff]  ;;  %v924_v2 = vpop.permute.xlu0 %923 }
 0x248   :  { %2150 = vmatmul.msk.f32.gmra.mxu1 %vm188_vm3, %v1269_v44  ;;  %v973_v9 = vadd.f32 %v924_v2, %v818_v51 }
 0x24d   :  { %1039 = vrot.lane.b32.xlu2 %v3099_v46, %s2626_s1  ;;  %v1194_v55 = vpop.permute.xlu2 %1193 }
 0x24e   :  { %1250 = vst.msk [vmem:[#allocation3 + $0x30] sm:$0xff] %vm1244_vm5, %v1194_v55 }
 0x24f   :  { %v926_v8 = vpop.permute.xlu0 %925 }
 0x250   :  { %v974_v18 = vadd.f32 %v926_v8, %v3003_v52 }
 0x255   :  { %v1192_v4 = vpop.permute.xlu1 %1191  ;;  %1041 = vrot.lane.b32.xlu2 %v878_v3, %s2626_s1  ;;  %v1271_v23 = vld [vmem:[#allocation3 + $0x30] sm:$0xff] }
 0x256   :  { %1249 = vst.msk [vmem:[#allocation3 + $0x28] sm:$0xff] %vm1244_vm5, %v1192_v4 }
 0x257   :  { %v1196_v5 = vpop.permute.xlu2 %1195  ;;  %v928_v57 = vpop.permute.xlu0 %927 }
 0x258   :  { %1251 = vst.msk [vmem:[#allocation3 + $0x38] sm:$0xff] %vm1244_vm5, %v1196_v5  ;;  %v975_v29 = vadd.f32 %v928_v57, %v3036_v12 }
 0x25d   :  { %v1024_v10 = vpop.permute.xlu1 %1023  ;;  %v1270_v11 = vld [vmem:[#allocation3 + $0x28] sm:$0xff] }
 0x25e   :  { %v1073_v13 = vadd.f32 %v1024_v10, %v973_v9  ;;  %2151 = vmatmul.msk.f32.gmra.mxu1 %vm188_vm3, %v1270_v11 }
 0x25f   :  { %v1272_v52 = vld [vmem:[#allocation3 + $0x38] sm:$0xff]  ;;  %v930_v16 = vpop.permute.xlu0 %929 }
 0x260   :  { %v1093_v7 = vadd.f32 0.08869219, %v1073_v13  ;;  %v976_v38 = vadd.f32 %v930_v16, %v2985_v19 }
 0x262   :  { %v1113_v15 = vmax.f32 %v1093_v7, 0.0 }
 0x264   :  { %v1133_v20 = vpack.c.bf16 %v1113_v15, %v1113_v15 }
 0x265   :  { %v1026_v22 = vpop.permute.xlu1 %1025 }
 0x266   :  { %v1153_v24 = vunpack.c.l.bf16 %v1133_v20  ;;  %v1074_v25 = vadd.f32 %v1026_v22, %v974_v18  ;;  %2152 = vmatmul.msk.f32.gmra.mxu1 %vm188_vm3, %v1271_v23 }
 0x267   :  { %v1198_v26 = vpop.permute.xlu2 %1197  ;;  %v932_v27 = vpop.permute.xlu0 %931 }
 0x268   :  { %v1094_v28 = vadd.f32 0.08869219, %v1074_v25  ;;  %1252 = vst.msk [vmem:[#allocation3 + $0x40] sm:$0xff] %vm1244_vm5, %v1198_v26  ;;  %1203 = vrot.lane.b32.xlu0 %v1153_v24, %s2623_s5  ;;  %v977_v47 = vadd.f32 %v932_v27, %v2993_v34  ;;  %v1276_v25 = vld [vmem:[#allocation3 + $0x58] sm:$0xff] }
 0x26a   :  { %v1114_v17 = vmax.f32 %v1094_v28, 0.0 }
 0x26c   :  { %v1134_v30 = vpack.c.bf16 %v1114_v17, %v1114_v17 }
 0x26d   :  { %v1028_v31 = vpop.permute.xlu1 %1027 }
 0x26e   :  { %v1154_v32 = vunpack.c.l.bf16 %v1134_v30  ;;  %v1075_v36 = vadd.f32 %v1028_v31, %v975_v29  ;;  %2153 = vmatmul.msk.f32.gmra.mxu1 %vm188_vm3, %v1272_v52 }
 0x26f   :  { %v1273_v41 = vld [vmem:[#allocation3 + $0x40] sm:$0xff]  ;;  %v1034_v1 = vpop.permute.xlu0 %1033 }
 0x270   :  { %v1095_v62 = vadd.f32 0.08869219, %v1075_v36  ;;  %1205 = vrot.lane.b32.xlu0 %v1154_v32, %s2623_s5 }
 0x272   :  { %v1115_v37 = vmax.f32 %v1095_v62, 0.0 }
 0x274   :  { %v1135_v39 = vpack.c.bf16 %v1115_v37, %v1115_v37 }
 0x275   :  { %v1030_v40 = vpop.permute.xlu1 %1029 }
 0x276   :  { %v1155_v42 = vunpack.c.l.bf16 %v1135_v39  ;;  %v1076_v43 = vadd.f32 %v1030_v40, %v976_v38  ;;  %2154 = vmatmul.msk.f32.gmra.mxu1 %vm188_vm3, %v1273_v41 }
 0x277   :  { %v1200_v12 = vpop.permute.xlu2 %1199 }
 0x278   :  { %v1096_v45 = vadd.f32 0.08869219, %v1076_v43  ;;  %1253 = vst.msk [vmem:[#allocation3 + $0x48] sm:$0xff] %vm1244_vm5, %v1200_v12  ;;  %1207 = vrot.lane.b32.xlu0 %v1155_v42, %s2623_s5 }
 0x27a   :  { %v1116_v6 = vmax.f32 %v1096_v45, 0.0 }
 0x27c   :  { %v1136_v48 = vpack.c.bf16 %v1116_v6, %v1116_v6 }
 0x27d   :  { %v1032_v49 = vpop.permute.xlu1 %1031 }
 0x27e   :  { %v1156_v19 = vunpack.c.l.bf16 %v1136_v48  ;;  %v1077_v53 = vadd.f32 %v1032_v49, %v977_v47 }
 0x27f   :  { %v1274_v35 = vld [vmem:[#allocation3 + $0x48] sm:$0xff] }
 0x280   :  { %v1097_v54 = vadd.f32 0.08869219, %v1077_v53  ;;  %2155 = vmatmul.msk.f32.gmra.mxu1 %vm188_vm3, %v1274_v35  ;;  %1209 = vrot.lane.b32.xlu0 %v1156_v19, %s2623_s5 }
 0x282   :  { %v1117_v56 = vmax.f32 %v1097_v54, 0.0 }
 0x284   :  { %v1137_v58 = vpack.c.bf16 %v1117_v56, %v1117_v56 }
 0x285   :  { %v936_v61 = vpop.permute.xlu1 %935 }
 0x286   :  { %v1157_v59 = vunpack.c.l.bf16 %v1137_v58  ;;  %v979_v2 = vadd.f32 %v936_v61, %v3010_v0  ;;  %v3146_v0 = vpop.f32.mrf.mxu1 }
 0x287   :  { %v1202_v60 = vpop.permute.xlu2 %1201 }
 0x288   :  { %1254 = vst.msk [vmem:[#allocation3 + $0x50] sm:$0xff] %vm1244_vm5, %v1202_v60  ;;  %1211 = vrot.lane.b32.xlu1 %v1157_v59, %s2623_s5 }
 0x28d   :  { %v938_v4 = vpop.permute.xlu1 %937 }
 0x28e   :  { %v980_v13 = vadd.f32 %v938_v4, %v3057_v21 }
 0x28f   :  { %v934_v34 = vpop.permute.xlu2 %933  ;;  %v1275_v14 = vld [vmem:[#allocation3 + $0x50] sm:$0xff] }
 0x290   :  { %v978_v63 = vadd.f32 %v934_v34, %v3001_v50  ;;  %2156 = vmatmul.msk.f32.gmra.mxu1 %vm188_vm3, %v1275_v14 }
 0x292   :  { %v1078_v44 = vadd.f32 %v1034_v1, %v978_v63 }
 0x294   :  { %v1098_v55 = vadd.f32 0.08869219, %v1078_v44 }
 0x295   :  { %v940_v20 = vpop.permute.xlu1 %939  ;;  %v1387_v31 = vpop.f32.mrf.mxu1 }
 0x296   :  { %v1118_v3 = vmax.f32 %v1098_v55, 0.0  ;;  %v981_v23 = vadd.f32 %v940_v20, %v3087_v33 }
 0x297   :  { %v1036_v5 = vpop.permute.xlu2 %1035 }
 0x298   :  { %v1138_v51 = vpack.c.bf16 %v1118_v3, %v1118_v3  ;;  %v1079_v8 = vadd.f32 %v1036_v5, %v979_v2  ;;  %2157 = vmatmul.msk.f32.gmra.mxu1 %vm188_vm3, %v1276_v25 }
 0x29a   :  { %v1099_v9 = vadd.f32 0.08869219, %v1079_v8  ;;  %v1158_v10 = vunpack.c.l.bf16 %v1138_v51 }
 0x29c   :  { %v1119_v11 = vmax.f32 %v1099_v9, 0.0  ;;  %1213 = vrot.lane.b32.xlu2 %v1158_v10, %s2623_s5 }
 0x29d   :  { %v942_v29 = vpop.permute.xlu1 %941 }
 0x29e   :  { %v1139_v50 = vpack.c.bf16 %v1119_v11, %v1119_v11  ;;  %v982_v52 = vadd.f32 %v942_v29, %v3099_v46  ;;  %v1277_v46 = vld [vmem:[#allocation3 + $0x60] sm:$0xff] }
 0x29f   :  { %v1038_v7 = vpop.permute.xlu2 %1037 }
 0x2a0   :  { %v1159_v15 = vunpack.c.l.bf16 %v1139_v50  ;;  %v1080_v18 = vadd.f32 %v1038_v7, %v980_v13  ;;  %2158 = vmatmul.msk.f32.gmra.mxu1 %vm188_vm3, %v1277_v46 }
 0x2a2   :  { %v1100_v57 = vadd.f32 0.08869219, %v1080_v18  ;;  %1215 = vrot.lane.b32.xlu0 %v1159_v15, %s2623_s5 }
 0x2a4   :  { %v1120_v22 = vmax.f32 %v1100_v57, 0.0 }
 0x2a6   :  { %v1140_v24 = vpack.c.bf16 %v1120_v22, %v1120_v22 }
 0x2a7   :  { %v1040_v26 = vpop.permute.xlu2 %1039 }
 0x2a8   :  { %v1160_v28 = vunpack.c.l.bf16 %v1140_v24  ;;  %v1081_v21 = vadd.f32 %v1040_v26, %v981_v23 }
 0x2aa   :  { %v1101_v17 = vadd.f32 0.08869219, %v1081_v21  ;;  %1217 = vrot.lane.b32.xlu1 %v1160_v28, %s2623_s5 }
 0x2ab   :  { %v3154_v38 = vpop.f32.mrf.mxu1 }
 0x2ac   :  { %v1121_v30 = vmax.f32 %v1101_v17, 0.0 }
 0x2ae   :  { %v1141_v32 = vpack.c.bf16 %v1121_v30, %v1121_v30 }
 0x2af   :  { %v1042_v36 = vpop.permute.xlu2 %1041 }
 0x2b0   :  { %v1161_v16 = vunpack.c.l.bf16 %v1141_v32  ;;  %v1082_v62 = vadd.f32 %v1042_v36, %v982_v52 }
 0x2b2   :  { %v1102_v33 = vadd.f32 0.08869219, %v1082_v62  ;;  %1464 = vrot.lane.b32.xlu1 %v1387_v31, %s2627_s26  ;;  %1219 = vrot.lane.b32.xlu2 %v1161_v16, %s2623_s5 }
 0x2b4   :  { %v1122_v37 = vmax.f32 %v1102_v33, 0.0 }
 0x2b6   :  { %v1142_v39 = vpack.c.bf16 %v1122_v37, %v1122_v37 }
 0x2b8   :  { %v1162_v40 = vunpack.c.l.bf16 %v1142_v39  ;;  %v2407_v39 = vld [vmem:[#allocation5] sm:$0xff] }
 0x2b9   :  { %215 = vst.msk [vmem:[#allocation4 + $0x8] sm:$0xff] %vm213_vm6, %v2407_v39 }
 0x2ba   :  { %1514 = vrot.lane.b32.xlu2 %v3154_v38, %s2625_s8  ;;  %1221 = vrot.lane.b32.xlu0 %v1162_v40, %s2623_s5  ;;  %214 = vst.msk [vmem:[#allocation4] sm:$0xff] %vm213_vm6, %v2407_v39 }
 0x2bb   :  { %v1393_v41 = vpop.f32.mrf.mxu1  ;;  %216 = vst.msk [vmem:[#allocation4 + $0x10] sm:$0xff] %vm213_vm6, %v2407_v39 }
 0x2bc   :  { %217 = vst.msk [vmem:[#allocation4 + $0x18] sm:$0xff] %vm213_vm6, %v2407_v39 }
 0x2bd   :  { %218 = vst.msk [vmem:[#allocation4 + $0x20] sm:$0xff] %vm213_vm6, %v2407_v39 }
 0x2be   :  { %219 = vst.msk [vmem:[#allocation4 + $0x28] sm:$0xff] %vm213_vm6, %v2407_v39 }
 0x2bf   :  { %220 = vst.msk [vmem:[#allocation4 + $0x30] sm:$0xff] %vm213_vm6, %v2407_v39 }
 0x2c0   :  { %221 = vst.msk [vmem:[#allocation4 + $0x38] sm:$0xff] %vm213_vm6, %v2407_v39 }
 0x2c1   :  { %222 = vst.msk [vmem:[#allocation4 + $0x40] sm:$0xff] %vm213_vm6, %v2407_v39 }
 0x2c2   :  { %1466 = vrot.lane.b32.xlu0 %v1393_v41, %s2627_s26  ;;  %223 = vst.msk [vmem:[#allocation4 + $0x48] sm:$0xff] %vm213_vm6, %v2407_v39 }
 0x2c3   :  { %224 = vst.msk [vmem:[#allocation4 + $0x50] sm:$0xff] %vm213_vm6, %v2407_v39 }
 0x2c4   :  { %225 = vst.msk [vmem:[#allocation4 + $0x58] sm:$0xff] %vm213_vm6, %v2407_v39 }
 0x2c5   :  { %v3161_v42 = vpop.f32.mrf.mxu1  ;;  %226 = vst.msk [vmem:[#allocation4 + $0x60] sm:$0xff] %vm213_vm6, %v2407_v39 }
 0x2c6   :  { %1516 = vrot.lane.b32.xlu1 %v3161_v42, %s2625_s8  ;;  %227 = vst.msk [vmem:[#allocation4 + $0x68] sm:$0xff] %vm213_vm6, %v2407_v39 }
 0x2c7   :  { %228 = vst.msk [vmem:[#allocation4 + $0x70] sm:$0xff] %vm213_vm6, %v2407_v39 }
 0x2c8   :  { %229 = vst.msk [vmem:[#allocation4 + $0x78] sm:$0xff] %vm213_vm6, %v2407_v39  ;;  %v1653_v39 = vld [vmem:[#allocation4 + $0x38] sm:$0xff] }
 0x2da   :  { %v1204_v43 = vpop.permute.xlu0 %1203 }
 0x2db   :  { %1255 = vst.msk [vmem:[#allocation3 + $0x68] sm:$0xff] %vm1244_vm5, %v1204_v43  ;;  %v1399_v12 = vpop.f32.mrf.mxu1  ;;  %v1662_v43 = vld [vmem:[#allocation14] sm:$0xff] }
 0x2dc   :  { %1468 = vrot.lane.b32.xlu2 %v1399_v12, %s2627_s26  ;;  %1726 = vmatpush.msra.mxu2 %v1662_v43  ;;  %v1646_v12 = vld [vmem:[#allocation4] sm:$0xff] }
 0x2e2   :  { %v1206_v45 = vpop.permute.xlu0 %1205  ;;  %v1278_v27 = vld [vmem:[#allocation3 + $0x68] sm:$0xff] }
 0x2e3   :  { %1256 = vst.msk [vmem:[#allocation3 + $0x70] sm:$0xff] %vm1244_vm5, %v1206_v45  ;;  %v3168_v6 = vpop.f32.mrf.mxu1  ;;  %2159 = vmatmul.msk.f32.gmra.mxu1 %vm188_vm3, %v1278_v27 }
 0x2e4   :  { %1518 = vrot.lane.b32.xlu0 %v3168_v6, %s2625_s8 }
 0x2ea   :  { %v1208_v47 = vpop.permute.xlu0 %1207  ;;  %v1279_v48 = vld [vmem:[#allocation3 + $0x70] sm:$0xff] }
 0x2eb   :  { %1257 = vst.msk [vmem:[#allocation3 + $0x78] sm:$0xff] %vm1244_vm5, %v1208_v47  ;;  %v1405_v49 = vpop.f32.mrf.mxu1  ;;  %2160 = vmatmul.msk.f32.gmra.mxu1 %vm188_vm3, %v1279_v48 }
 0x2ec   :  { %1470 = vrot.lane.b32.xlu1 %v1405_v49, %s2627_s26 }
 0x2f2   :  { %v1210_v19 = vpop.permute.xlu0 %1209  ;;  %v1280_v53 = vld [vmem:[#allocation3 + $0x78] sm:$0xff] }
 0x2f3   :  { %1258 = vst.msk [vmem:[#allocation3 + $0x80] sm:$0xff] %vm1244_vm5, %v1210_v19  ;;  %v3177_v35 = vpop.f32.mrf.mxu1  ;;  %2161 = vmatmul.msk.f32.gmra.mxu1 %vm188_vm3, %v1280_v53 }
 0x2f4   :  { %1520 = vrot.lane.b32.xlu2 %v3177_v35, %s2625_s8 }
 0x2f6   :  { %v1214_v54 = vpop.permute.xlu2 %1213 }
 0x2f7   :  { %1260 = vst.msk [vmem:[#allocation3 + $0x90] sm:$0xff] %vm1244_vm5, %v1214_v54 }
 0x2fa   :  { %v1212_v56 = vpop.permute.xlu1 %1211  ;;  %v1281_v58 = vld [vmem:[#allocation3 + $0x80] sm:$0xff] }
 0x2fb   :  { %1259 = vst.msk [vmem:[#allocation3 + $0x88] sm:$0xff] %vm1244_vm5, %v1212_v56  ;;  %2162 = vmatmul.msk.f32.gmra.mxu1 %vm188_vm3, %v1281_v58 }
 0x2fd   :  { %v1411_v59 = vpop.f32.mrf.mxu1 }
 0x2fe   :  { %1472 = vrot.lane.b32.xlu0 %v1411_v59, %s2627_s26  ;;  %v1283_v61 = vld [vmem:[#allocation3 + $0x90] sm:$0xff] }
 0x302   :  { %v1282_v60 = vld [vmem:[#allocation3 + $0x88] sm:$0xff] }
 0x303   :  { %2163 = vmatmul.msk.f32.gmra.mxu1 %vm188_vm3, %v1282_v60 }
 0x30b   :  { %2164 = vmatmul.msk.f32.gmra.mxu1 %vm188_vm3, %v1283_v61 }
 0x30c   :  { %v1220_v34 = vpop.permute.xlu2 %1219 }
 0x30d   :  { %1263 = vst.msk [vmem:[#allocation3 + $0xa8] sm:$0xff] %vm1244_vm5, %v1220_v34  ;;  %v1414_v14 = vpop.f32.mrf.mxu1 }
 0x30e   :  { %1522 = vrot.lane.b32.xlu1 %v1414_v14, %s2625_s8 }
 0x314   :  { %v1216_v63 = vpop.permute.xlu0 %1215  ;;  %v1515_v5 = vpop.permute.xlu2 %1514  ;;  %v1286_v11 = vld [vmem:[#allocation3 + $0xa8] sm:$0xff] }
 0x315   :  { %1261 = vst.msk [vmem:[#allocation3 + $0x98] sm:$0xff] %vm1244_vm5, %v1216_v63  ;;  %v1417_v3 = vpop.f32.mrf.mxu1 }
 0x31c   :  { %v1218_v1 = vpop.permute.xlu1 %1217  ;;  %v1284_v44 = vld [vmem:[#allocation3 + $0x98] sm:$0xff] }
 0x31d   :  { %1262 = vst.msk [vmem:[#allocation3 + $0xa0] sm:$0xff] %vm1244_vm5, %v1218_v1  ;;  %2165 = vmatmul.msk.f32.gmra.mxu1 %vm188_vm3, %v1284_v44  ;;  %v3202_v21 = vpop.f32.mrf.mxu1 }
 0x324   :  { %v1465_v55 = vpop.permute.xlu1 %1464  ;;  %v1285_v2 = vld [vmem:[#allocation3 + $0xa0] sm:$0xff] }
 0x325   :  { %v1494_v4 = vadd.f32 %v1465_v55, %v3146_v0  ;;  %2166 = vmatmul.msk.f32.gmra.mxu1 %vm188_vm3, %v1285_v2 }
 0x327   :  { %v1544_v51 = vadd.f32 %v1515_v5, %v1494_v4 }
 0x329   :  { %v1554_v8 = vadd.f32 0.23291183, %v1544_v51 }
 0x32b   :  { %v1564_v9 = vmax.f32 %v1554_v8, 0.0 }
 0x32c   :  { %v1222_v10 = vpop.permute.xlu0 %1221 }
 0x32d   :  { %v1574_v13 = vpack.c.bf16 %v1564_v9, %v1564_v9  ;;  %1264 = vst.msk [vmem:[#allocation3 + $0xb0] sm:$0xff] %vm1244_vm5, %v1222_v10  ;;  %2167 = vmatmul.msk.f32.gmra.mxu1 %vm188_vm3, %v1286_v11 }
 0x32f   :  { %v1584_v50 = vunpack.c.l.bf16 %v1574_v13 }
 0x331   :  { %1604 = vrot.lane.b32.xlu2 %v1584_v50, %s2623_s5 }
 0x334   :  { %v1467_v7 = vpop.permute.xlu0 %1466  ;;  %v1287_v15 = vld [vmem:[#allocation3 + $0xb0] sm:$0xff] }
 0x335   :  { %2168 = vmatmul.msk.f32.gmra.mxu1 %vm188_vm3, %v1287_v15  ;;  %v1495_v18 = vadd.f32 %v1467_v7, %v3154_v38  ;;  %v1288_v38 = vld [vmem:[#allocation3 + $0xb8] sm:$0xff] }
 0x336   :  { %v1469_v25 = vpop.permute.xlu2 %1468  ;;  %2169 = vmatmul.msk.f32.vlgmr.msrb.gmra.mxu2 %vm188_vm3, %v1288_v38 }
 0x337   :  { %v1496_v26 = vadd.f32 %v1469_v25, %v3161_v42 }
 0x338   :  { %v1517_v20 = vpop.permute.xlu1 %1516 }
 0x339   :  { %v1545_v57 = vadd.f32 %v1517_v20, %v1495_v18 }
 0x33b   :  { %v1555_v0 = vadd.f32 0.23291183, %v1545_v57 }
 0x33d   :  { %v1565_v22 = vmax.f32 %v1555_v0, 0.0 }
 0x33e   :  { %2170 = vmatmul.msk.f32.vlgmr.msra.gmra.mxu2 %vm213_vm6, %v1646_v12 }
 0x33f   :  { %v1575_v23 = vpack.c.bf16 %v1565_v22, %v1565_v22 }
 0x341   :  { %v1585_v24 = vunpack.c.l.bf16 %v1575_v23 }
 0x343   :  { %1606 = vrot.lane.b32.xlu0 %v1585_v24, %s2623_s5 }
 0x34e   :  { %v1521_v16 = vpop.permute.xlu2 %1520 }
 0x356   :  { %v1519_v28 = vpop.permute.xlu0 %1518 }
 0x357   :  { %v1546_v17 = vadd.f32 %v1519_v28, %v1496_v26 }
 0x359   :  { %v1556_v29 = vadd.f32 0.23291183, %v1546_v17 }
 0x35b   :  { %v1566_v30 = vmax.f32 %v1556_v29, 0.0 }
 0x35d   :  { %v1576_v31 = vpack.c.bf16 %v1566_v30, %v1566_v30 }
 0x35e   :  { %v1471_v52 = vpop.permute.xlu1 %1470 }
 0x35f   :  { %v1586_v32 = vunpack.c.l.bf16 %v1576_v31  ;;  %v1497_v36 = vadd.f32 %v1471_v52, %v3168_v6 }
 0x360   :  { %v1422_v62 = vpop.f32.mrf.mxu1 }
 0x361   :  { %v1547_v33 = vadd.f32 %v1521_v16, %v1497_v36  ;;  %1474 = vrot.lane.b32.xlu1 %v1422_v62, %s2627_s26  ;;  %1608 = vrot.lane.b32.xlu0 %v1586_v32, %s2623_s5  ;;  %v1652_v36 = vld [vmem:[#allocation4 + $0x30] sm:$0xff] }
 0x363   :  { %v1557_v37 = vadd.f32 0.23291183, %v1547_v33 }
 0x365   :  { %v1567_v40 = vmax.f32 %v1557_v37, 0.0 }
 0x367   :  { %v1577_v46 = vpack.c.bf16 %v1567_v40, %v1567_v40 }
 0x368   :  { %v3212_v41 = vpop.f32.mrf.mxu1 }
 0x369   :  { %1524 = vrot.lane.b32.xlu2 %v3212_v41, %s2625_s8  ;;  %v1587_v42 = vunpack.c.l.bf16 %v1577_v46 }
 0x36b   :  { %1610 = vrot.lane.b32.xlu0 %v1587_v42, %s2623_s5  ;;  %v1654_v42 = vld [vmem:[#allocation4 + $0x40] sm:$0xff] }
 0x370   :  { %v1428_v45 = vpop.f32.mrf.mxu1  ;;  %v1473_v6 = vpop.permute.xlu0 %1472 }
 0x371   :  { %1476 = vrot.lane.b32.xlu1 %v1428_v45, %s2627_s26  ;;  %v1498_v47 = vadd.f32 %v1473_v6, %v3177_v35 }
 0x378   :  { %v1431_v27 = vpop.f32.mrf.mxu1 }
 0x379   :  { %1526 = vrot.lane.b32.xlu2 %v1431_v27, %s2625_s8 }
 0x380   :  { %v1523_v48 = vpop.permute.xlu1 %1522  ;;  %v1434_v49 = vpop.f32.mrf.mxu1 }
 0x381   :  { %v1548_v19 = vadd.f32 %v1523_v48, %v1498_v47  ;;  %1478 = vrot.lane.b32.xlu1 %v1434_v49, %s2627_s26 }
 0x383   :  { %v1558_v53 = vadd.f32 0.23291183, %v1548_v19 }
 0x385   :  { %v1568_v54 = vmax.f32 %v1558_v53, 0.0 }
 0x387   :  { %v1578_v56 = vpack.c.bf16 %v1568_v54, %v1568_v54 }
 0x388   :  { %v3234_v58 = vpop.f32.mrf.mxu1 }
 0x389   :  { %v1588_v59 = vunpack.c.l.bf16 %v1578_v56  ;;  %1528 = vrot.lane.b32.xlu2 %v3234_v58, %s2625_s8 }
 0x38b   :  { %v1605_v60 = vpop.permute.xlu2 %1604  ;;  %1612 = vrot.lane.b32.xlu0 %v1588_v59, %s2623_s5 }
 0x38c   :  { %1636 = vst.msk [vmem:[#allocation4 + $0x8] sm:$0xff] %vm1635_vm7, %v1605_v60 }
 0x393   :  { %v1647_v35 = vld [vmem:[#allocation4 + $0x8] sm:$0xff] }
 0x394   :  { %2171 = vmatmul.msk.f32.gmra.mxu2 %vm213_vm6, %v1647_v35 }
 0x39a   :  { %v1440_v61 = vpop.f32.mrf.mxu1 }
 0x39b   :  { %1480 = vrot.lane.b32.xlu1 %v1440_v61, %s2627_s26 }
 0x3a2   :  { %v3242_v34 = vpop.f32.mrf.mxu1 }
 0x3a3   :  { %1530 = vrot.lane.b32.xlu2 %v3242_v34, %s2625_s8 }
 0x3aa   :  { %v1446_v14 = vpop.f32.mrf.mxu1 }
 0x3ab   :  { %1482 = vrot.lane.b32.xlu0 %v1446_v14, %s2627_s26 }
 0x3b2   :  { %v1449_v63 = vpop.f32.mrf.mxu1 }
 0x3b3   :  { %1532 = vrot.lane.b32.xlu1 %v1449_v63, %s2625_s8 }
 0x3b5   :  { %v1607_v1 = vpop.permute.xlu0 %1606 }
 0x3b6   :  { %1637 = vst.msk [vmem:[#allocation4 + $0x10] sm:$0xff] %vm1635_vm7, %v1607_v1 }
 0x3b9   :  { %v1452_v57 = vpop.f32.mrf.mxu2 }
 0x3bd   :  { %v1648_v44 = vld [vmem:[#allocation4 + $0x10] sm:$0xff] }
 0x3be   :  { %2172 = vmatmul.msk.f32.gmra.mxu2 %vm213_vm6, %v1648_v44 }
 0x3c1   :  { %v3270_v54 = vpop.f32.mrf.mxu2 }
 0x3c3   :  { %v1525_v4 = vpop.permute.xlu2 %1524 }
 0x3d3   :  { %v1475_v55 = vpop.permute.xlu1 %1474  ;;  %v1609_v3 = vpop.permute.xlu0 %1608 }
 0x3d4   :  { %v1499_v2 = vadd.f32 %v1475_v55, %v3202_v21  ;;  %1638 = vst.msk [vmem:[#allocation4 + $0x18] sm:$0xff] %vm1635_vm7, %v1609_v3  ;;  %v1527_v15 = vpop.permute.xlu2 %1526 }
 0x3d6   :  { %v1549_v5 = vadd.f32 %v1525_v4, %v1499_v2 }
 0x3d8   :  { %v1559_v51 = vadd.f32 0.23291183, %v1549_v5  ;;  %v1660_v5 = vld [vmem:[#allocation4 + $0x70] sm:$0xff] }
 0x3da   :  { %v1569_v8 = vmax.f32 %v1559_v51, 0.0 }
 0x3db   :  { %v1649_v10 = vld [vmem:[#allocation4 + $0x18] sm:$0xff] }
 0x3dc   :  { %v1579_v9 = vpack.c.bf16 %v1569_v8, %v1569_v8  ;;  %2173 = vmatmul.msk.f32.gmra.mxu2 %vm213_vm6, %v1649_v10 }
 0x3dd   :  { %v1611_v11 = vpop.permute.xlu0 %1610 }
 0x3de   :  { %1639 = vst.msk [vmem:[#allocation4 + $0x20] sm:$0xff] %vm1635_vm7, %v1611_v11  ;;  %v1589_v13 = vunpack.c.l.bf16 %v1579_v9 }
 0x3e0   :  { %1614 = vrot.lane.b32.xlu2 %v1589_v13, %s2623_s5 }
 0x3e3   :  { %v1477_v50 = vpop.permute.xlu1 %1476  ;;  %v1529_v28 = vpop.permute.xlu2 %1528 }
 0x3e4   :  { %v1500_v7 = vadd.f32 %v1477_v50, %v3212_v41 }
 0x3e5   :  { %v1650_v18 = vld [vmem:[#allocation4 + $0x20] sm:$0xff] }
 0x3e6   :  { %v1550_v20 = vadd.f32 %v1527_v15, %v1500_v7  ;;  %2174 = vmatmul.msk.f32.gmra.mxu2 %vm213_vm6, %v1650_v18 }
 0x3e8   :  { %v1560_v0 = vadd.f32 0.23291183, %v1550_v20 }
 0x3ea   :  { %v1570_v22 = vmax.f32 %v1560_v0, 0.0 }
 0x3ec   :  { %v1580_v23 = vpack.c.bf16 %v1570_v22, %v1570_v22 }
 0x3ee   :  { %v1590_v24 = vunpack.c.l.bf16 %v1580_v23 }
 0x3f0   :  { %1616 = vrot.lane.b32.xlu0 %v1590_v24, %s2623_s5 }
 0x3f3   :  { %v1479_v25 = vpop.permute.xlu1 %1478 }
 0x3f4   :  { %v1501_v26 = vadd.f32 %v1479_v25, %v1431_v27 }
 0x3f6   :  { %v1551_v21 = vadd.f32 %v1529_v28, %v1501_v26 }
 0x3f8   :  { %v1561_v17 = vadd.f32 0.23291183, %v1551_v21 }
 0x3fa   :  { %v1571_v29 = vmax.f32 %v1561_v17, 0.0 }
 0x3fc   :  { %v1581_v30 = vpack.c.bf16 %v1571_v29, %v1571_v29 }
 0x3fd   :  { %v1613_v31 = vpop.permute.xlu0 %1612  ;;  %v1531_v33 = vpop.permute.xlu2 %1530 }
 0x3fe   :  { %1640 = vst.msk [vmem:[#allocation4 + $0x28] sm:$0xff] %vm1635_vm7, %v1613_v31  ;;  %v1591_v52 = vunpack.c.l.bf16 %v1581_v30 }
 0x400   :  { %1618 = vrot.lane.b32.xlu1 %v1591_v52, %s2623_s5 }
 0x405   :  { %v1651_v32 = vld [vmem:[#allocation4 + $0x28] sm:$0xff] }
 0x406   :  { %2175 = vmatmul.msk.f32.gmra.mxu2 %vm213_vm6, %v1651_v32 }
 0x40d   :  { %v1481_v16 = vpop.permute.xlu1 %1480 }
 0x40e   :  { %v1502_v62 = vadd.f32 %v1481_v16, %v3234_v58  ;;  %2176 = vmatmul.msk.f32.gmra.mxu2 %vm213_vm6, %v1652_v36  ;;  %v2257_v36 = vld [vmem:[#allocation15 + $0x38] sm:$0xff]  ;;  %v2256_v16 = vld [vmem:[#allocation15 + $0x30] sm:$0xff] }
 0x40f   :  { %1955 = vmatpush.bf16.msrb.mxu3 %v2257_v36 }
 0x410   :  { %v1552_v37 = vadd.f32 %v1531_v33, %v1502_v62  ;;  %v1878_v62 = vld [vmem:[#allocation9] sm:$0xff] }
 0x412   :  { %v1562_v38 = vadd.f32 0.23291183, %v1552_v37 }
 0x413   :  { %1956 = vmatpush.bf16.msrb.mxu3 %v2256_v16 }
 0x414   :  { %v1572_v40 = vmax.f32 %v1562_v38, 0.0 }
 0x416   :  { %v1582_v46 = vpack.c.bf16 %v1572_v40, %v1572_v40  ;;  %2177 = vmatmul.msk.f32.gmra.mxu2 %vm213_vm6, %v1653_v39 }
 0x417   :  { %v1731_v56 = vpop.f32.mrf.mxu2 }
 0x418   :  { %v1592_v41 = vunpack.c.l.bf16 %v1582_v46 }
 0x41a   :  { %1620 = vrot.lane.b32.xlu2 %v1592_v41, %s2623_s5 }
 0x41d   :  { %v1483_v43 = vpop.permute.xlu0 %1482 }
 0x41e   :  { %2178 = vmatmul.msk.f32.gmra.mxu2 %vm213_vm6, %v1654_v42  ;;  %v1503_v12 = vadd.f32 %v1483_v43, %v3242_v34 }
 0x425   :  { %v1533_v45 = vpop.permute.xlu1 %1532 }
 0x426   :  { %v1553_v27 = vadd.f32 %v1533_v45, %v1503_v12 }
 0x428   :  { %v1563_v6 = vadd.f32 0.23291183, %v1553_v27  ;;  %v2255_v27 = vld [vmem:[#allocation15 + $0x28] sm:$0xff] }
 0x429   :  { %1957 = vmatpush.bf16.msrb.mxu3 %v2255_v27 }
 0x42a   :  { %v1573_v47 = vmax.f32 %v1563_v6, 0.0  ;;  %v2254_v6 = vld [vmem:[#allocation15 + $0x20] sm:$0xff] }
 0x42c   :  { %v1583_v48 = vpack.c.bf16 %v1573_v47, %v1573_v47  ;;  %v2253_v47 = vld [vmem:[#allocation15 + $0x18] sm:$0xff] }
 0x42d   :  { %1958 = vmatpush.bf16.msrb.mxu3 %v2254_v6 }
 0x42e   :  { %v1593_v49 = vunpack.c.l.bf16 %v1583_v48 }
 0x430   :  { %1622 = vrot.lane.b32.xlu0 %v1593_v49, %s2623_s5 }
 0x431   :  { %1959 = vmatpush.bf16.msrb.mxu3 %v2253_v47 }
 0x43a   :  { %v1615_v19 = vpop.permute.xlu2 %1614 }
 0x43b   :  { %1641 = vst.msk [vmem:[#allocation4 + $0x48] sm:$0xff] %vm1635_vm7, %v1615_v19 }
 0x441   :  { %v1734_v58 = vpop.f32.mrf.mxu2 }
 0x442   :  { %v1655_v53 = vld [vmem:[#allocation4 + $0x48] sm:$0xff] }
 0x443   :  { %2179 = vmatmul.msk.f32.gmra.mxu2 %vm213_vm6, %v1655_v53 }
 0x45f   :  { %v1737_v59 = vpop.f32.mrf.mxu2 }
 0x460   :  { %1782 = vrot.lane.b32.xlu1 %v1737_v59, %s2628_s30 }
 0x462   :  { %v1617_v60 = vpop.permute.xlu0 %1616 }
 0x463   :  { %1642 = vst.msk [vmem:[#allocation4 + $0x50] sm:$0xff] %vm1635_vm7, %v1617_v60  ;;  %v2252_v60 = vld [vmem:[#allocation15 + $0x10] sm:$0xff] }
 0x464   :  { %1960 = vmatpush.bf16.msrb.mxu3 %v2252_v60 }
 0x469   :  { %v1740_v35 = vpop.f32.mrf.mxu2 }
 0x46a   :  { %1812 = vrot.lane.b32.xlu1 %v1740_v35, %s2629_s11  ;;  %v1656_v61 = vld [vmem:[#allocation4 + $0x50] sm:$0xff] }
 0x46b   :  { %2180 = vmatmul.msk.f32.gmra.mxu2 %vm213_vm6, %v1656_v61  ;;  %v2250_v61 = vld [vmem:[#allocation15] sm:$0xff] }
 0x472   :  { %v1619_v34 = vpop.permute.xlu1 %1618 }
 0x473   :  { %1643 = vst.msk [vmem:[#allocation4 + $0x58] sm:$0xff] %vm1635_vm7, %v1619_v34 }
 0x474   :  { %v1621_v14 = vpop.permute.xlu2 %1620 }
 0x475   :  { %1644 = vst.msk [vmem:[#allocation4 + $0x60] sm:$0xff] %vm1635_vm7, %v1621_v14  ;;  %v596_v14 = vld [vmem:[#allocation2 + $0x158] sm:$0xff] }
 0x476   :  { %2144 = vmatmul.msk.f32.gmra.mxu3 %vm143_vm1, %v596_v14 }
 0x47a   :  { %v1657_v63 = vld [vmem:[#allocation4 + $0x58] sm:$0xff] }
 0x47b   :  { %2181 = vmatmul.msk.f32.gmra.mxu2 %vm213_vm6, %v1657_v63 }
 0x47c   :  { %v1658_v1 = vld [vmem:[#allocation4 + $0x60] sm:$0xff] }
 0x483   :  { %2182 = vmatmul.msk.f32.gmra.mxu2 %vm213_vm6, %v1658_v1  ;;  %v2265_v1 = vld [vmem:[#allocation17 + $0x38] sm:$0xff] }
 0x489   :  { %v1743_v44 = vpop.f32.mrf.mxu2 }
 0x48a   :  { %1784 = vrot.lane.b32.xlu2 %v1743_v44, %s2628_s30  ;;  %v2264_v44 = vld [vmem:[#allocation17 + $0x30] sm:$0xff] }
 0x491   :  { %v1746_v55 = vpop.f32.mrf.mxu2 }
 0x492   :  { %1814 = vrot.lane.b32.xlu0 %v1746_v55, %s2629_s11  ;;  %v2263_v55 = vld [vmem:[#allocation17 + $0x28] sm:$0xff] }
 0x499   :  { %v1749_v2 = vpop.f32.mrf.mxu2 }
 0x49a   :  { %v2262_v2 = vld [vmem:[#allocation17 + $0x20] sm:$0xff] }
 0x4a1   :  { %v1751_v51 = vpop.f32.mrf.mxu2 }
 0x4a2   :  { %v1623_v3 = vpop.permute.xlu0 %1622 }
 0x4a3   :  { %1645 = vst.msk [vmem:[#allocation4 + $0x68] sm:$0xff] %vm1635_vm7, %v1623_v3 }
 0x4aa   :  { %v1659_v4 = vld [vmem:[#allocation4 + $0x68] sm:$0xff] }
 0x4ab   :  { %2183 = vmatmul.msk.f32.gmra.mxu2 %vm213_vm6, %v1659_v4 }
 0x4b3   :  { %2184 = vmatmul.msk.f32.gmra.mxu2 %vm213_vm6, %v1660_v5 }
 0x4c6   :  { %v1754_v8 = vpop.f32.mrf.mxu2 }
 0x4c7   :  { %1786 = vrot.lane.b32.xlu0 %v1754_v8, %s2628_s30  ;;  %v2261_v8 = vld [vmem:[#allocation17 + $0x18] sm:$0xff] }
 0x4d2   :  { %v1783_v57 = vpop.permute.xlu1 %1782 }
 0x4d3   :  { %v1799_v23 = vadd.f32 %v1783_v57, %v1734_v58 }
 0x4dc   :  { %v1813_v22 = vpop.permute.xlu1 %1812 }
 0x4dd   :  { %v1829_v24 = vadd.f32 %v1813_v22, %v1799_v23  ;;  %v2636_v22 = vmov 0  }
 0x4df   :  { %v1835_v26 = vadd.f32 -0.08857632, %v1829_v24 }
 0x4e1   :  { %v1841_v28 = vmax.f32 %v1835_v26, 0.0 }
 0x4e4   :  { %v1785_v13 = vpop.permute.xlu2 %1784 }
 0x4e5   :  { %v1800_v7 = vadd.f32 %v1785_v13, %v1740_v35  ;;  %v2251_v35 = vld [vmem:[#allocation15 + $0x8] sm:$0xff]  ;;  %v2258_v13 = vld [vmem:[#allocation17] sm:$0xff] }
 0x4e6   :  { %1961 = vmatpush.bf16.msrb.mxu3 %v2251_v35 }
 0x4ea   :  { %1962 = vmatpush.bf16.msrb.mxu3 %v2250_v61 }
 0x4ee   :  { %v1757_v9 = vpop.f32.mrf.mxu2  ;;  %2038 = vmatpush.bf16.msra.mxu3 %v2265_v1 }
 0x4f2   :  { %2039 = vmatpush.bf16.msra.mxu3 %v2264_v44 }
 0x4f6   :  { %2040 = vmatpush.bf16.msra.mxu3 %v2263_v55 }
 0x4fa   :  { %2041 = vmatpush.bf16.msra.mxu3 %v2262_v2 }
 0x4fe   :  { %v1760_v10 = vpop.f32.mrf.mxu2  ;;  %2042 = vmatpush.bf16.msra.mxu3 %v2261_v8 }
 0x4ff   :  { %1788 = vrot.lane.b32.xlu2 %v1760_v10, %s2628_s30  ;;  %v881_v10 = vpop.f32.mrf.mxu3 }
 0x504   :  { %v1815_v50 = vpop.permute.xlu0 %1814 }
 0x505   :  { %v1830_v15 = vadd.f32 %v1815_v50, %v1800_v7  ;;  %v2401_v50 = vld [vmem:[%s3319_s7] ss:$0 sm:$0xff] }
 0x506   :  { %v3287_v11 = vpop.f32.mrf.mxu2 }
 0x507   :  { %1816 = vrot.lane.b32.xlu2 %v1757_v9, %s2629_s11  ;;  %1818 = vrot.lane.b32.xlu0 %v3287_v11, %s2629_s11  ;;  %v1836_v18 = vadd.f32 -0.08857632, %v1830_v15 }
 0x509   :  { %v1842_v20 = vmax.f32 %v1836_v18, 0.0 }
 0x50f   :  { %1780 = vrot.lane.b32.xlu2 %v1731_v56, %s2628_s30  ;;  %1810 = vrot.lane.b32.xlu0 %v1734_v58, %s2629_s11 }
 0x517   :  { %1855 = vrot.lane.b32.xlu2 %v1842_v20, %s2630_s4 }
 0x52e   :  { %v1766_v0 = vpop.f32.mrf.mxu2 }
 0x52f   :  { %1790 = vrot.lane.b32.xlu1 %v1766_v0, %s2628_s30  ;;  %v2051_v0 = vld [vmem:[%s3314_s2] sm:$0x3]  ;;  %s2637_s2 = smov [#allocation18]  }
 0x530   :  { %vm2052_vm15 = vnez %v2051_v0  ;;  %s2085_s7 = sshll.u32 %s2637_s2, 4  ;;  %s2086_s7 = int_to_ptr.vmem [resolvable:$true] %s2085_s7 }
 0x531   :  { %v2053_v23 = vsel %vm2052_vm15, 16843009, %v2636_v22 }
 0x532   :  { %v2054_v24 = vunpack.c.0.s8 %v2053_v23 }
 0x534   :  { %vm2055_vm0 = vcmp.ne.s32.totalorder %v2054_v24, 0 }
 0x536   :  { %v1769_v25 = vpop.f32.mrf.mxu2 }
 0x537   :  { %1820 = vrot.lane.b32.xlu1 %v1769_v25, %s2629_s11  ;;  %v2402_v25 = vld [vmem:[%s3321_s9] ss:$0 sm:$0xff] }
 0x539   :  { %v1787_v17 = vpop.permute.xlu0 %1786 }
 0x53a   :  { %v1801_v29 = vadd.f32 %v1787_v17, %v1751_v51 }
 0x53f   :  { %1849 = vrot.lane.b32.xlu1 %v1841_v28, %s2631_s12 }
 0x559   :  { %v1789_v21 = vpop.permute.xlu2 %1788 }
 0x55a   :  { %v1802_v33 = vadd.f32 %v1789_v21, %v1757_v9  ;;  %v2260_v9 = vld [vmem:[#allocation17 + $0x10] sm:$0xff] }
 0x55b   :  { %2043 = vmatpush.bf16.msra.mxu3 %v2260_v9 }
 0x561   :  { %v1817_v30 = vpop.permute.xlu2 %1816 }
 0x562   :  { %v1831_v31 = vadd.f32 %v1817_v30, %v1801_v29  ;;  %v1661_v29 = vld [vmem:[#allocation4 + $0x78] sm:$0xff] }
 0x563   :  { %2185 = vmatmul.msk.f32.gmra.mxu2 %vm213_vm6, %v1661_v29 }
 0x564   :  { %v1837_v52 = vadd.f32 -0.08857632, %v1831_v31 }
 0x566   :  { %v1843_v32 = vmax.f32 %v1837_v52, 0.0 }
 0x568   :  { %1861 = vrot.lane.b32.xlu0 %v1843_v32, %s2632_s6 }
 0x569   :  { %v1781_v40 = vpop.permute.xlu2 %1780 }
 0x56a   :  { %v1798_v41 = vadd.f32 %v1781_v40, %v3270_v54 }
 0x570   :  { %1880 = vrot.lane.b32.xlu0 %v1878_v62, %s2633_s13 }
 0x571   :  { %v1856_v59 = vpop.permute.xlu2 %1855 }
 0x579   :  { %v1819_v37 = vpop.permute.xlu0 %1818 }
 0x57a   :  { %v1832_v38 = vadd.f32 %v1819_v37, %v1802_v33 }
 0x57c   :  { %v1838_v39 = vadd.f32 -0.08857632, %v1832_v38 }
 0x57e   :  { %v1844_v46 = vmax.f32 %v1838_v39, 0.0 }
 0x580   :  { %1867 = vrot.lane.b32.xlu1 %v1844_v46, %s2634_s14 }
 0x581   :  { %v1811_v42 = vpop.permute.xlu0 %1810 }
 0x582   :  { %v1828_v43 = vadd.f32 %v1811_v42, %v1798_v41 }
 0x584   :  { %v1834_v12 = vadd.f32 -0.08857632, %v1828_v43 }
 0x586   :  { %v1840_v45 = vmax.f32 %v1834_v12, 0.0 }
 0x588   :  { %1847 = vst.msk [vmem:[#allocation5] sm:$0xff] %vm1846_vm8, %v1840_v45 }
 0x5a1   :  { %v1791_v48 = vpop.permute.xlu1 %1790 }
 0x5a2   :  { %v1803_v49 = vadd.f32 %v1791_v48, %v3287_v11  ;;  %v2259_v11 = vld [vmem:[#allocation17 + $0x8] sm:$0xff] }
 0x5a3   :  { %2044 = vmatpush.bf16.msra.mxu3 %v2259_v11 }
 0x5a7   :  { %2045 = vmatpush.bf16.msra.mxu3 %v2258_v13 }
 0x5a9   :  { %v1821_v19 = vpop.permute.xlu1 %1820 }
 0x5aa   :  { %v1833_v53 = vadd.f32 %v1821_v19, %v1803_v49 }
 0x5ac   :  { %v1839_v54 = vadd.f32 -0.08857632, %v1833_v53 }
 0x5ae   :  { %v1845_v56 = vmax.f32 %v1839_v54, 0.0 }
 0x5b0   :  { %1873 = vrot.lane.b32.xlu2 %v1845_v56, %s2635_s15 }
 0x5b1   :  { %v1850_v58 = vpop.permute.xlu1 %1849 }
 0x5b2   :  { %1853 = vst.msk [vmem:[#allocation5] sm:$0xff] %vm1852_vm9, %v1850_v58 }
 0x5b3   :  { %1859 = vst.msk [vmem:[#allocation5] sm:$0xff] %vm1858_vm10, %v1856_v59 }
 0x5da   :  { %v1862_v34 = vpop.permute.xlu0 %1861 }
 0x5db   :  { %1865 = vst.msk [vmem:[#allocation5] sm:$0xff] %vm1864_vm11, %v1862_v34 }
 0x5e2   :  { %v1881_v3 = vpop.permute.xlu0 %1880 }
 0x5e6   :  { %v1772_v36 = vpop.f32.mrf.mxu2 }
 0x5f2   :  { %v1868_v63 = vpop.permute.xlu1 %1867 }
 0x5f3   :  { %1871 = vst.msk [vmem:[#allocation5] sm:$0xff] %vm1870_vm12, %v1868_v63 }
 0x60a   :  { %v1874_v4 = vpop.permute.xlu2 %1873 }
 0x60b   :  { %1877 = vst.msk [vmem:[#allocation5] sm:$0xff] %vm1876_vm13, %v1874_v4 }
 0x60c   :  { %1884 = vst.msk [vmem:[#allocation5] sm:$0xff] %vm1883_vm14, %v1881_v3 }
 0x613   :  { %v1885_v5 = vld [vmem:[#allocation5] sm:$0xff] }
 0x614   :  { %v1886_v51 = vpack.c.bf16 %v1885_v5, %v1885_v5 }
 0x616   :  { %1963 = vmatmul.bf16.vlgmr.msrb.gmra.mxu3 %v1886_v51 }
 0x699   :  { %v1964_v7 = vpop.f32.mrf.mxu3 }
 0x69a   :  { %v1965_v15 = vadd.f32 %v2401_v50, %v1964_v7 }
 0x69c   :  { %v1968_v18 = vmax.f32 %v1965_v15, 0.0 }
 0x69e   :  { %v1969_v20 = vpack.c.bf16 %v1968_v18, %v1968_v18 }
 0x6a0   :  { %2046 = vmatmul.bf16.vlgmr.msra.gmra.mxu3 %v1969_v20 }
 0x6a1   :  { %v1966_v57 = vpop.f32.mrf.mxu3 }
 0x723   :  { %v2047_v26 = vpop.f32.mrf.mxu3 }
 0x724   :  { %v2048_v28 = vadd.f32 %v2402_v25, %v2047_v26 }
 0x726   :  { %v2056_v21 = vsel %vm2055_vm0, %v2048_v28, -1e+09 }
 0x727   :  { %2057 = vmax.xlane.f32.xlu1 %v2056_v21 }
 0x72b   :  { %v2049_v17 = vpop.f32.mrf.mxu3 }
 0x79a   :  { %v2058_v30 = vpop.xlane.xlu1 %2057 }
 0x79b   :  { %v2059_v31 = vsub.f32 %v2056_v21, %v2058_v30 }
 0x79d   :  { %v2060_v52 = vmul.f32 1.442695, %v2059_v31 }
 0x79f   :  { %2403 = vpow2.f32 %v2060_v52 }
 0x7a5   :  { %v2404_v32 = vpop.eup %2403 }
 0x7a6   :  { %2062 = vadd.xlane.f32.xlu2 %v2404_v32 }
 0x819   :  { %v2063_v16 = vpop.xlane.xlu2 %2062 }
 0x81a   :  { %2405 = vrcp.f32 %v2063_v16  ;;  %v2075_v38 = vand.u32 2147483648, %v2063_v16  ;;  %v2073_v40 = vand.u32 2147483647, %v2063_v16  ;;  %vm2069_vm2 = vweird.f32 %v2063_v16 }
 0x81c   :  { %v2076_v41 = vor.u32 1.1754944e-38, %v2075_v38  ;;  %vm2074_vm4 = vcmp.eq.f32.partialorder %v2073_v40, 8.507059e+37 }
 0x820   :  { %v2406_v62 = vpop.eup %2405 }
 0x821   :  { %v2065_v33 = vmul.f32 %v2406_v62, %v2063_v16  ;;  %vm2070_vm1 = vweird.f32 %v2406_v62 }
 0x822   :  { %vm2071_vm3 = vmor %vm2069_vm2, %vm2070_vm1 }
 0x823   :  { %v2066_v37 = vsub.f32 1.0, %v2065_v33 }
 0x825   :  { %v2067_v39 = vmul.f32 %v2406_v62, %v2066_v37 }
 0x827   :  { %v2068_v46 = vadd.f32 %v2406_v62, %v2067_v39 }
 0x829   :  { %v2072_v42 = vsel %vm2071_vm3, %v2406_v62, %v2068_v46 }
 0x82a   :  { %v2077_v43 = vsel %vm2074_vm4, %v2076_v41, %v2072_v42 }
 0x82b   :  { %v2078_v12 = vmul.f32 %v2404_v32, %v2077_v43 }
 0x82d   :  { %2079 = vst [vmem:[#allocation18] sm:$0xff] %v2078_v12 }
 0x82e   :  { %2090 = dma.vmem_to_hbm [thread:$0]  %s2086_s7, 128, %s2088_s22, [#allocation8]  }
 0x82f   :  { %2608 = dma.done.wait [#allocation8], 128  }
 0x830   :  { %2609 = vsyncadd [#allocation8], 4294967168 }
 0x831   :  { %2095 = vsyncpa [#allocation7], 1 }
 0x832   :  { %2096 = vsyncpa [#allocation10], 1 }
 0x833   :  { %2097 = vsyncpa [#allocation13], 1 }
 0x834   :  { %2098 = vsyncpa [#allocation16], 1 }
 0x835   :  { %2099 = vsyncpa [#allocation8], 1 }

</bundles_post_ra>
